<compile_context>
chip_gen: v7x
topology: tpu7x:2x2x1
jax: 0.10.0
libtpu: 0.0.40
codegen_flags: <defaults>
</compile_context>

<pallas_src>
import math

import numpy as np
import jax
import jax.numpy as jnp
from jax import lax
from jax.experimental import pallas as pl
from jax.experimental.pallas import tpu as pltpu

_INV_SQRT2 = 1.0 / math.sqrt(2.0)

# ---------------------------------------------------------------------------
# Tap bookkeeping for the stride-2, k=3, pad=1 conv.
# Tap (ks, kh, kw) of output (so, ho, wo) reads y[2so+ks-1, 2ho+kh-1, 2wo+kw-1].
# After padding by one and a space-to-depth split (parity r, coarse index q)
# this is the contiguous window
#   z[parity=(ks%2, kh%2, kw%2)][so + ks//2, ho + kh//2, wo + kw//2].
# Taps are ordered so taps sharing the same activation block (same parity plane
# and same qs) are adjacent -> the pipeline can skip re-fetching that block
# between consecutive grid steps (27 -> 12 distinct fetches per output plane).
# ---------------------------------------------------------------------------
def _tap_order():
    taps = []
    for ks in range(3):
        for ph in range(2):
            for pw in range(2):
                for kh in ((0, 2) if ph == 0 else (1,)):
                    for kw in ((0, 2) if pw == 0 else (1,)):
                        taps.append((ks, kh, kw))
    return taps


_TAPS = _tap_order()
_N_TAPS = len(_TAPS)  # 27
# columns per tap: rs, rh, rw (parities) | qs_off, qh_off, qw_off (coarse offs)
_TAP_TABLE = np.array(
    [[ks % 2, kh % 2, kw % 2, ks // 2, kh // 2, kw // 2] for ks, kh, kw in _TAPS],
    dtype=np.int32,
).reshape(-1)                                    # flat (27*6,) for SMEM reads
_TAP_PERM = np.array([ks * 9 + kh * 3 + kw for ks, kh, kw in _TAPS], np.int32)


# ---------------------------------------------------------------------------
# Kernel 1: fused exact-GELU + LayerNorm over the channel axis (row tiled)
# ---------------------------------------------------------------------------
def _gelu_ln_kernel(x_ref, w_ref, b_ref, o_ref):
    x = x_ref[...].astype(jnp.float32)
    g = 0.5 * x * (1.0 + lax.erf(x * _INV_SQRT2))           # exact GELU (erf)
    mu = jnp.mean(g, axis=-1, keepdims=True)
    var = jnp.mean((g - mu) ** 2, axis=-1, keepdims=True)   # biased, torch LN
    y = (g - mu) * lax.rsqrt(var + 1e-5)
    o_ref[...] = (y * w_ref[...] + b_ref[...]).astype(o_ref.dtype)


def gelu_layernorm(x2d, ln_w, ln_b, *, out_dtype=jnp.bfloat16, block_rows=512):
    N, C = x2d.shape
    tm = min(block_rows, N)
    return pl.pallas_call(
        _gelu_ln_kernel,
        out_shape=jax.ShapeDtypeStruct((N, C), out_dtype),
        grid=(pl.cdiv(N, tm),),
        in_specs=[
            pl.BlockSpec((tm, C), lambda i: (i, 0)),
            pl.BlockSpec((1, C), lambda i: (0, 0)),
            pl.BlockSpec((1, C), lambda i: (0, 0)),
        ],
        out_specs=pl.BlockSpec((tm, C), lambda i: (i, 0)),
        compiler_params=pltpu.CompilerParams(
            dimension_semantics=("parallel",),
            vmem_limit_bytes=32 * 1024 * 1024,
        ),
    )(x2d, ln_w.reshape(1, C).astype(jnp.float32),
      ln_b.reshape(1, C).astype(jnp.float32))


# ---------------------------------------------------------------------------
# Kernel 2: Conv3d(C -> 2C, k=3, s=2, p=1) as tap-accumulated MXU matmuls
# ---------------------------------------------------------------------------
def _prepare_conv_weight(conv_w, conv_b, *, compute_dtype=jnp.bfloat16):
    """torch Conv3d weight (2C, C, 3,3,3) -> (27, C, 2C), rows in tap order.
    NOTE: in a real model do this once at load time, not per forward call."""
    Co, C = conv_w.shape[0], conv_w.shape[1]
    w = jnp.transpose(conv_w, (2, 3, 4, 1, 0)).reshape(27, C, Co)
    w_taps = w[_TAP_PERM].astype(compute_dtype)
    bias = conv_b.reshape(1, Co).astype(jnp.float32)
    return w_taps, bias


def conv3d_k3s2p1(z, w_taps, bias, tap_tbl, *, B, So, Ho, Wo, C, out_dtype):
    """z: (B*8, So+1, Ho+1, Wo+1, C) space-to-depth padded activation (bf16)."""
    Co = 2 * C
    M = Ho * Wo

    def kernel(tbl_ref, z_ref, w_ref, b_ref, o_ref, acc_ref):
        t = pl.program_id(2)

        @pl.when(t == 0)
        def _init():
            acc_ref[...] = jnp.zeros_like(acc_ref)

        # coarse offsets (0 or 1) of this tap inside the (Ho+1, Wo+1) plane;
        # select between the two static windows -> no dynamic sublane slicing.
        qh = tbl_ref[t * 6 + 4]
        qw = tbl_ref[t * 6 + 5]
        tile = z_ref[...]                                    # (Ho+1, Wo+1, C)
        th = jnp.where(qh == 0, tile[0:Ho, :, :], tile[1:Ho + 1, :, :])
        patch = jnp.where(qw == 0, th[:, 0:Wo, :], th[:, 1:Wo + 1, :])
        acc_ref[...] += jnp.dot(patch.reshape(M, C), w_ref[...],
                                preferred_element_type=jnp.float32)

        @pl.when(t == pl.num_programs(2) - 1)
        def _store():
            o_ref[...] = (acc_ref[...] + b_ref[...]).astype(o_ref.dtype)

    def z_index(b, so, t, tbl):
        zb = b * 8 + tbl[t * 6 + 0] * 4 + tbl[t * 6 + 1] * 2 + tbl[t * 6 + 2]
        return (zb, so + tbl[t * 6 + 3], 0, 0, 0)

    grid_spec = pltpu.PrefetchScalarGridSpec(
        num_scalar_prefetch=1,
        grid=(B, So, _N_TAPS),                    # reduction (taps) axis last
        in_specs=[
            pl.BlockSpec((None, None, Ho + 1, Wo + 1, C), z_index),
            pl.BlockSpec((None, C, Co), lambda b, so, t, tbl: (t, 0, 0)),
            pl.BlockSpec((1, Co), lambda b, so, t, tbl: (0, 0)),
        ],
        out_specs=pl.BlockSpec((None, None, M, Co),
                               lambda b, so, t, tbl: (b, so, 0, 0)),
        scratch_shapes=[pltpu.VMEM((M, Co), jnp.float32)],
    )
    return pl.pallas_call(
        kernel,
        out_shape=jax.ShapeDtypeStruct((B, So, M, Co), out_dtype),
        grid_spec=grid_spec,
        compiler_params=pltpu.CompilerParams(
            dimension_semantics=("parallel", "parallel", "arbitrary"),
            vmem_limit_bytes=32 * 1024 * 1024,
        ),
    )(tap_tbl, z, w_taps, bias)


# ---------------------------------------------------------------------------
# PatchMerging forward
# ---------------------------------------------------------------------------
def patch_merging_forward(x, S, H, W, params):
    """x: (B, L, C) with L == S*H*W. Returns (B, So*Ho*Wo, 2*C)."""
    B, L, C = x.shape
    assert L == S * H * W, "input feature has wrong size"
    So, Ho, Wo = (S + 1) // 2, (H + 1) // 2, (W + 1) // 2

    # 1) fused exact-GELU + LayerNorm (tiled Pallas kernel), bf16 output.
    y = gelu_layernorm(x.reshape(B * L, C), params["ln_w"], params["ln_b"])
    y = y.reshape(B, S, H, W, C)

    # 2) conv halo padding + space-to-depth: each tap becomes a contiguous
    #    window of one parity plane (no 27x im2col matrix in HBM).
    # TODO(synk): this single relayout copy could also be folded into the
    # GELU+LN kernel's output scatter or the conv kernel via manual DMA.
    pad = ((0, 0),
           (1, 2 * (So + 1) - S - 1),
           (1, 2 * (Ho + 1) - H - 1),
           (1, 2 * (Wo + 1) - W - 1),
           (0, 0))
    z = jnp.pad(y, pad)
    z = z.reshape(B, So + 1, 2, Ho + 1, 2, Wo + 1, 2, C)
    z = jnp.transpose(z, (0, 2, 4, 6, 1, 3, 5, 7))   # (B,2,2,2,So+1,Ho+1,Wo+1,C)
    z = z.reshape(B * 8, So + 1, Ho + 1, Wo + 1, C)

    # 3) Conv3d(C->2C, k=3, s=2, p=1) as tap-accumulated bf16 MXU matmuls.
    w_taps, bias = _prepare_conv_weight(params["conv_w"], params["conv_b"])
    out = conv3d_k3s2p1(z, w_taps, bias, jnp.asarray(_TAP_TABLE),
                        B=B, So=So, Ho=Ho, Wo=Wo, C=C, out_dtype=x.dtype)
    return out.reshape(B, So * Ho * Wo, 2 * C)


# ---------------------------------------------------------------------------
# Pure-JAX reference (correctness check)
# ---------------------------------------------------------------------------
def _reference(x, S, H, W, params):
    B, L, C = x.shape
    g = 0.5 * x * (1.0 + lax.erf(x * _INV_SQRT2))
    mu = jnp.mean(g, axis=-1, keepdims=True)
    var = jnp.mean((g - mu) ** 2, axis=-1, keepdims=True)
    y = (g - mu) * lax.rsqrt(var + 1e-5) * params["ln_w"] + params["ln_b"]
    y = y.reshape(B, S, H, W, C).transpose(0, 4, 1, 2, 3)  # NCDHW
    out = lax.conv_general_dilated(
        y, params["conv_w"], window_strides=(2, 2, 2), padding=[(1, 1)] * 3,
        dimension_numbers=("NCDHW", "OIDHW", "NCDHW"),
    ) + params["conv_b"].reshape(1, -1, 1, 1, 1)
    return out.transpose(0, 2, 3, 4, 1).reshape(B, -1, 2 * C)


if __name__ == "__main__":
    B, C = 2, 16
    S, H, W = 8, 8, 8
    L = S * H * W

    key = jax.random.PRNGKey(0)
    kx, kw, kb, klw, klb = jax.random.split(key, 5)

    x = jax.random.normal(kx, (B, L, C), dtype=jnp.float32)
    params = {
        # nn.Conv3d(dim, 2*dim, 3): weight (2C, C, 3, 3, 3), bias (2C,)
        "conv_w": jax.random.normal(kw, (2 * C, C, 3, 3, 3), jnp.float32) * 0.1,
        "conv_b": jax.random.normal(kb, (2 * C,), jnp.float32) * 0.1,
        # nn.LayerNorm(dim): weight/bias (C,)
        "ln_w": 1.0 + 0.1 * jax.random.normal(klw, (C,), jnp.float32),
        "ln_b": 0.1 * jax.random.normal(klb, (C,), jnp.float32),
    }

    fwd = jax.jit(patch_merging_forward, static_argnums=(1, 2, 3))
    out = jax.block_until_ready(fwd(x, S, H, W, params))

    ref = _reference(x, S, H, W, params)
    assert out.shape == (B, (S // 2) * (H // 2) * (W // 2), 2 * C), out.shape
    # bf16 MXU inputs with f32 accumulation -> compare loosely vs f32 reference
    assert jnp.allclose(out, ref, atol=5e-2, rtol=5e-2), float(
        jnp.max(jnp.abs(out - ref)))

    print("KERNEL_OK")
</pallas_src>

<mosaic_0001>
module attributes {stable_mosaic.version = 11 : i64} {
  func.func @_gelu_ln_kernel(%arg0: i32, %arg1: memref<512x16xf32, #tpu.memory_space<vmem>>, %arg2: memref<1x16xf32, #tpu.memory_space<vmem>>, %arg3: memref<1x16xf32, #tpu.memory_space<vmem>>, %arg4: memref<512x16xbf16, #tpu.memory_space<vmem>>) attributes {dimension_semantics = [#tpu.dimension_semantics<parallel>], iteration_bounds = array<i64: 2>, scalar_prefetch = 0 : i64, scratch_operands = 0 : i64, tpu.core_type = #tpu.core_type<tc>, window_params = [{transform_indices = @transform_0, window_bounds = array<i64: 512, 16>}, {pipeline_mode = #tpu.pipeline_mode<synchronous>, transform_indices = @transform_1, window_bounds = array<i64: 1, 16>}, {pipeline_mode = #tpu.pipeline_mode<synchronous>, transform_indices = @transform_2, window_bounds = array<i64: 1, 16>}, {transform_indices = @transform_3, window_bounds = array<i64: 512, 16>}]} {
    %c0 = arith.constant 0 : index
    %c0_0 = arith.constant 0 : index
    %0 = vector.load %arg1[%c0, %c0_0] : memref<512x16xf32, #tpu.memory_space<vmem>>, vector<512x16xf32>
    %cst = arith.constant 5.000000e-01 : f32
    %1 = vector.broadcast %cst : f32 to vector<512x16xf32>
    %2 = arith.mulf %1, %0 : vector<512x16xf32>
    %cst_1 = arith.constant 0.707106769 : f32
    %3 = vector.broadcast %cst_1 : f32 to vector<512x16xf32>
    %4 = arith.mulf %0, %3 : vector<512x16xf32>
    %5 = math.erf %4 : vector<512x16xf32>
    %cst_2 = arith.constant 1.000000e+00 : f32
    %6 = vector.broadcast %cst_2 : f32 to vector<512x16xf32>
    %7 = arith.addf %6, %5 : vector<512x16xf32>
    %8 = arith.mulf %2, %7 : vector<512x16xf32>
    %cst_3 = arith.constant dense<0.000000e+00> : vector<512xf32>
    %9 = vector.multi_reduction <add>, %8, %cst_3 [1] : vector<512x16xf32> to vector<512xf32>
    %10 = vector.shape_cast %9 : vector<512xf32> to vector<512x1xf32>
    %cst_4 = arith.constant 1.600000e+01 : f32
    %11 = vector.broadcast %cst_4 : f32 to vector<512x1xf32>
    %12 = arith.divf %10, %11 : vector<512x1xf32>
    %13 = vector.broadcast %12 : vector<512x1xf32> to vector<512x16xf32>
    %14 = arith.subf %8, %13 : vector<512x16xf32>
    %15 = arith.mulf %14, %14 : vector<512x16xf32>
    %cst_5 = arith.constant dense<0.000000e+00> : vector<512xf32>
    %16 = vector.multi_reduction <add>, %15, %cst_5 [1] : vector<512x16xf32> to vector<512xf32>
    %17 = vector.shape_cast %16 : vector<512xf32> to vector<512x1xf32>
    %cst_6 = arith.constant 1.600000e+01 : f32
    %18 = vector.broadcast %cst_6 : f32 to vector<512x1xf32>
    %19 = arith.divf %17, %18 : vector<512x1xf32>
    %20 = vector.broadcast %12 : vector<512x1xf32> to vector<512x16xf32>
    %21 = arith.subf %8, %20 : vector<512x16xf32>
    %cst_7 = arith.constant 9.99999974E-6 : f32
    %22 = vector.broadcast %cst_7 : f32 to vector<512x1xf32>
    %23 = arith.addf %19, %22 : vector<512x1xf32>
    %24 = math.rsqrt %23 : vector<512x1xf32>
    %25 = vector.broadcast %24 : vector<512x1xf32> to vector<512x16xf32>
    %26 = arith.mulf %21, %25 : vector<512x16xf32>
    %c0_8 = arith.constant 0 : index
    %c0_9 = arith.constant 0 : index
    %27 = vector.load %arg2[%c0_8, %c0_9] : memref<1x16xf32, #tpu.memory_space<vmem>>, vector<1x16xf32>
    %28 = vector.broadcast %27 : vector<1x16xf32> to vector<512x16xf32>
    %29 = arith.mulf %26, %28 : vector<512x16xf32>
    %c0_10 = arith.constant 0 : index
    %c0_11 = arith.constant 0 : index
    %30 = vector.load %arg3[%c0_10, %c0_11] : memref<1x16xf32, #tpu.memory_space<vmem>>, vector<1x16xf32>
    %31 = vector.broadcast %30 : vector<1x16xf32> to vector<512x16xf32>
    %32 = arith.addf %29, %31 : vector<512x16xf32>
    %33 = arith.truncf %32 : vector<512x16xf32> to vector<512x16xbf16>
    %c0_12 = arith.constant 0 : index
    %c0_13 = arith.constant 0 : index
    %34 = vector.load %arg4[%c0_12, %c0_13] : memref<512x16xbf16, #tpu.memory_space<vmem>>, vector<512x16xbf16>
    tpu.vector_store %arg4[%c0_12, %c0_13], %33 {strides = array<i32>} : memref<512x16xbf16, #tpu.memory_space<vmem>>, vector<512x16xbf16>,
    return
  }
  func.func @transform_0(%arg0: i32) -> (i32, i32) {
    %c0_i32 = arith.constant 0 : i32
    %c0_i32_0 = arith.constant 0 : i32
    return %arg0, %c0_i32 : i32, i32
  }
  func.func @transform_1(%arg0: i32) -> (i32, i32) {
    %c0_i32 = arith.constant 0 : i32
    %c0_i32_0 = arith.constant 0 : i32
    %c0_i32_1 = arith.constant 0 : i32
    return %c0_i32, %c0_i32_0 : i32, i32
  }
  func.func @transform_2(%arg0: i32) -> (i32, i32) {
    %c0_i32 = arith.constant 0 : i32
    %c0_i32_0 = arith.constant 0 : i32
    %c0_i32_1 = arith.constant 0 : i32
    return %c0_i32, %c0_i32_0 : i32, i32
  }
  func.func @transform_3(%arg0: i32) -> (i32, i32) {
    %c0_i32 = arith.constant 0 : i32
    %c0_i32_0 = arith.constant 0 : i32
    return %arg0, %c0_i32 : i32, i32
  }
}

module attributes {stable_mosaic.version = 11 : i64} {
  func.func @kernel(%arg0: i32, %arg1: i32, %arg2: i32, %arg3: memref<162xi32, #tpu.memory_space<smem>>, %arg4: memref<1x1x5x5x16xbf16, #tpu.memory_space<vmem>>, %arg5: memref<1x16x32xbf16, #tpu.memory_space<vmem>>, %arg6: memref<1x32xf32, #tpu.memory_space<vmem>>, %arg7: memref<1x1x16x32xf32, #tpu.memory_space<vmem>>, %arg8: memref<16x32xf32, #tpu.memory_space<vmem>>) attributes {dimension_semantics = [#tpu.dimension_semantics<parallel>, #tpu.dimension_semantics<parallel>, #tpu.dimension_semantics<arbitrary>], iteration_bounds = array<i64: 2, 4, 27>, scalar_prefetch = 1 : i64, scratch_operands = 1 : i64, tpu.core_type = #tpu.core_type<tc>, window_params = [{transform_indices = @transform_0, window_bounds = array<i64: 1, 1, 5, 5, 16>}, {transform_indices = @transform_1, window_bounds = array<i64: 1, 16, 32>}, {pipeline_mode = #tpu.pipeline_mode<synchronous>, transform_indices = @transform_2, window_bounds = array<i64: 1, 32>}, {transform_indices = @transform_3, window_bounds = array<i64: 1, 1, 16, 32>}]} {
    %c0_i32 = arith.constant 0 : i32
    %0 = arith.cmpi eq, %arg2, %c0_i32 : i32
    %1 = arith.extui %0 : i1 to i32
    %c0_i32_0 = arith.constant 0 : i32
    %2 = arith.cmpi ne, %1, %c0_i32_0 : i32
    scf.if %2 {
      %cst_16 = arith.constant 0.000000e+00 : f32
      %31 = vector.broadcast %cst_16 : f32 to vector<16x32xf32>
      %c0_17 = arith.constant 0 : index
      %c0_18 = arith.constant 0 : index
      %32 = vector.load %arg8[%c0_17, %c0_18] : memref<16x32xf32, #tpu.memory_space<vmem>>, vector<16x32xf32>
      tpu.vector_store %arg8[%c0_17, %c0_18], %31 {strides = array<i32>} : memref<16x32xf32, #tpu.memory_space<vmem>>, vector<16x32xf32>,
    } else {
    }
    %c6_i32 = arith.constant 6 : i32
    %3 = arith.muli %arg2, %c6_i32 : i32
    %c4_i32 = arith.constant 4 : i32
    %4 = arith.addi %3, %c4_i32 : i32
    %5 = arith.index_cast %4 : i32 to index
    %6 = memref.load %arg3[%5] : memref<162xi32, #tpu.memory_space<smem>>
    %c6_i32_1 = arith.constant 6 : i32
    %7 = arith.muli %arg2, %c6_i32_1 : i32
    %c5_i32 = arith.constant 5 : i32
    %8 = arith.addi %7, %c5_i32 : i32
    %9 = arith.index_cast %8 : i32 to index
    %10 = memref.load %arg3[%9] : memref<162xi32, #tpu.memory_space<smem>>
    %c0 = arith.constant 0 : index
    %c0_2 = arith.constant 0 : index
    %c0_3 = arith.constant 0 : index
    %c0_4 = arith.constant 0 : index
    %c0_5 = arith.constant 0 : index
    %11 = vector.load %arg4[%c0, %c0_2, %c0_3, %c0_4, %c0_5] : memref<1x1x5x5x16xbf16, #tpu.memory_space<vmem>>, vector<1x1x5x5x16xbf16>
    %12 = vector.shape_cast %11 : vector<1x1x5x5x16xbf16> to vector<5x5x16xbf16>
    %c0_i32_6 = arith.constant 0 : i32
    %13 = arith.cmpi eq, %6, %c0_i32_6 : i32
    %14 = vector.extract_strided_slice %12 {offsets = [0, 0, 0], sizes = [4, 5, 16], strides = [1, 1, 1]} : vector<5x5x16xbf16> to vector<4x5x16xbf16>
    %15 = vector.extract_strided_slice %12 {offsets = [1, 0, 0], sizes = [4, 5, 16], strides = [1, 1, 1]} : vector<5x5x16xbf16> to vector<4x5x16xbf16>
    %16 = arith.select %13, %14, %15 : vector<4x5x16xbf16>
    %c0_i32_7 = arith.constant 0 : i32
    %17 = arith.cmpi eq, %10, %c0_i32_7 : i32
    %18 = vector.extract_strided_slice %16 {offsets = [0, 0, 0], sizes = [4, 4, 16], strides = [1, 1, 1]} : vector<4x5x16xbf16> to vector<4x4x16xbf16>
    %19 = vector.extract_strided_slice %16 {offsets = [0, 1, 0], sizes = [4, 4, 16], strides = [1, 1, 1]} : vector<4x5x16xbf16> to vector<4x4x16xbf16>
    %20 = arith.select %17, %18, %19 : vector<4x4x16xbf16>
    %c0_8 = arith.constant 0 : index
    %c0_9 = arith.constant 0 : index
    %21 = vector.load %arg8[%c0_8, %c0_9] : memref<16x32xf32, #tpu.memory_space<vmem>>, vector<16x32xf32>
    %22 = vector.shape_cast %20 : vector<4x4x16xbf16> to vector<16x16xbf16>
    %c0_10 = arith.constant 0 : index
    %c0_11 = arith.constant 0 : index
    %c0_12 = arith.constant 0 : index
    %23 = vector.load %arg5[%c0_10, %c0_11, %c0_12] : memref<1x16x32xbf16, #tpu.memory_space<vmem>>, vector<1x16x32xbf16>
    %24 = vector.shape_cast %23 : vector<1x16x32xbf16> to vector<16x32xbf16>
    %cst = arith.constant dense<0.000000e+00> : vector<16x32xf32>
    %25 = tpu.matmul %22, %24, %cst {dimension_numbers = #tpu.dot_dimension_numbers<[1], [0], [0], [1], [0, 0, 1, 1], [], []>} : vector<16x16xbf16>, vector<16x32xbf16>, vector<16x32xf32> -> vector<16x32xf32>
    %26 = arith.addf %21, %25 : vector<16x32xf32>
    %c0_13 = arith.constant 0 : index
    %c0_14 = arith.constant 0 : index
    %27 = vector.load %arg8[%c0_13, %c0_14] : memref<16x32xf32, #tpu.memory_space<vmem>>, vector<16x32xf32>
    tpu.vector_store %arg8[%c0_13, %c0_14], %26 {strides = array<i32>} : memref<16x32xf32, #tpu.memory_space<vmem>>, vector<16x32xf32>,
    %c26_i32 = arith.constant 26 : i32
    %28 = arith.cmpi eq, %arg2, %c26_i32 : i32
    %29 = arith.extui %28 : i1 to i32
    %c0_i32_15 = arith.constant 0 : i32
    %30 = arith.cmpi ne, %29, %c0_i32_15 : i32
    scf.if %30 {
      %c0_16 = arith.constant 0 : index
      %c0_17 = arith.constant 0 : index
      %31 = vector.load %arg8[%c0_16, %c0_17] : memref<16x32xf32, #tpu.memory_space<vmem>>, vector<16x32xf32>
      %c0_18 = arith.constant 0 : index
      %c0_19 = arith.constant 0 : index
      %32 = vector.load %arg6[%c0_18, %c0_19] : memref<1x32xf32, #tpu.memory_space<vmem>>, vector<1x32xf32>
      %33 = vector.broadcast %32 : vector<1x32xf32> to vector<16x32xf32>
      %34 = arith.addf %31, %33 : vector<16x32xf32>
      %c0_20 = arith.constant 0 : index
      %c0_21 = arith.constant 0 : index
      %c0_22 = arith.constant 0 : index
      %c0_23 = arith.constant 0 : index
      %35 = vector.load %arg7[%c0_20, %c0_21, %c0_22, %c0_23] : memref<1x1x16x32xf32, #tpu.memory_space<vmem>>, vector<1x1x16x32xf32>
      %36 = vector.shape_cast %35 : vector<1x1x16x32xf32> to vector<16x32xf32>
      %37 = vector.shape_cast %34 : vector<16x32xf32> to vector<1x1x16x32xf32>
      tpu.vector_store %arg7[%c0_20, %c0_21, %c0_22, %c0_23], %37 {strides = array<i32>} : memref<1x1x16x32xf32, #tpu.memory_space<vmem>>, vector<1x1x16x32xf32>,
    } else {
    }
    return
  }
  func.func @transform_0(%arg0: i32, %arg1: i32, %arg2: i32, %arg3: memref<162xi32, #tpu.memory_space<smem>>) -> (i32, i32, i32, i32, i32) {
    %c8_i32 = arith.constant 8 : i32
    %0 = arith.muli %arg0, %c8_i32 : i32
    %c6_i32 = arith.constant 6 : i32
    %1 = arith.muli %arg2, %c6_i32 : i32
    %c0_i32 = arith.constant 0 : i32
    %2 = arith.addi %1, %c0_i32 : i32
    %3 = arith.index_cast %2 : i32 to index
    %4 = memref.load %arg3[%3] : memref<162xi32, #tpu.memory_space<smem>>
    %c4_i32 = arith.constant 4 : i32
    %5 = arith.muli %4, %c4_i32 : i32
    %6 = arith.addi %0, %5 : i32
    %c6_i32_0 = arith.constant 6 : i32
    %7 = arith.muli %arg2, %c6_i32_0 : i32
    %c1_i32 = arith.constant 1 : i32
    %8 = arith.addi %7, %c1_i32 : i32
    %9 = arith.index_cast %8 : i32 to index
    %10 = memref.load %arg3[%9] : memref<162xi32, #tpu.memory_space<smem>>
    %c2_i32 = arith.constant 2 : i32
    %11 = arith.muli %10, %c2_i32 : i32
    %12 = arith.addi %6, %11 : i32
    %c6_i32_1 = arith.constant 6 : i32
    %13 = arith.muli %arg2, %c6_i32_1 : i32
    %c2_i32_2 = arith.constant 2 : i32
    %14 = arith.addi %13, %c2_i32_2 : i32
    %15 = arith.index_cast %14 : i32 to index
    %16 = memref.load %arg3[%15] : memref<162xi32, #tpu.memory_space<smem>>
    %17 = arith.addi %12, %16 : i32
    %c6_i32_3 = arith.constant 6 : i32
    %18 = arith.muli %arg2, %c6_i32_3 : i32
    %c3_i32 = arith.constant 3 : i32
    %19 = arith.addi %18, %c3_i32 : i32
    %20 = arith.index_cast %19 : i32 to index
    %21 = memref.load %arg3[%20] : memref<162xi32, #tpu.memory_space<smem>>
    %22 = arith.addi %arg1, %21 : i32
    %c0_i32_4 = arith.constant 0 : i32
    %c0_i32_5 = arith.constant 0 : i32
    %c0_i32_6 = arith.constant 0 : i32
    %c0_i32_7 = arith.constant 0 : i32
    return %17, %22, %c0_i32_4, %c0_i32_5, %c0_i32_6 : i32, i32, i32, i32, i32
  }
  func.func @transform_1(%arg0: i32, %arg1: i32, %arg2: i32, %arg3: memref<162xi32, #tpu.memory_space<smem>>) -> (i32, i32, i32) {
    %c0_i32 = arith.constant 0 : i32
    %c0_i32_0 = arith.constant 0 : i32
    %c0_i32_1 = arith.constant 0 : i32
    return %arg2, %c0_i32, %c0_i32_0 : i32, i32, i32
  }
  func.func @transform_2(%arg0: i32, %arg1: i32, %arg2: i32, %arg3: memref<162xi32, #tpu.memory_space<smem>>) -> (i32, i32) {
    %c0_i32 = arith.constant 0 : i32
    %c0_i32_0 = arith.constant 0 : i32
    %c0_i32_1 = arith.constant 0 : i32
    return %c0_i32, %c0_i32_0 : i32, i32
  }
  func.func @transform_3(%arg0: i32, %arg1: i32, %arg2: i32, %arg3: memref<162xi32, #tpu.memory_space<smem>>) -> (i32, i32, i32, i32) {
    %c0_i32 = arith.constant 0 : i32
    %c0_i32_0 = arith.constant 0 : i32
    %c0_i32_1 = arith.constant 0 : i32
    return %arg0, %arg1, %c0_i32, %c0_i32_0 : i32, i32, i32, i32
  }
}

</mosaic_0001>

<bundles_post_ra>
// kernel: patch_merging_forward.2
= control target key start
LH: loop header
LB: loop body
LE: loop exit
PB: predicated region body
PF: predicated region fallthrough
CT: control target
= control target key end

     0   :  { %s2346_s12 = smov 0   ;;  %s3643_s0 = inlined_call_operand.vmem [shape: f32[1024,16], index: 0, kind: input, shape index: {}]   ;;  %s3644_s1 = inlined_call_operand.vmem [shape: f32[1,16], index: 1, kind: input, shape index: {}]   ;;  %s3645_s2 = inlined_call_operand.vmem [shape: f32[1,16], index: 2, kind: input, shape index: {}]   ;;  %s3646_s3 = inlined_call_operand.vmem [shape: bf16[1024,16], index: 3, kind: output, shape index: {}]  }
   0x1 LB: > { %s1911_s13 = sadd.s32 4294967295, %s2324_s12   ;;  %p1915_p0 = scmp.ge.s32.totalorder %s2324_s12, 1  ;;  %s2324_s12 = sphi %s2346_s12, %s13_s12  }
   0x2   : > { %p138_p1 = scmp.lt.s32.totalorder %s2324_s12, 3 }
   0x4   : > { %p139_p2 = pnand %p1915_p0, %p138_p1 }
   0x6   : > { %142 = sbr.rel (%p139_p2) target bundleno = 481 (0x1e1), region = 32 }
   0xd   : > { %s1916_s14 = sshll.u32 %s1911_s13, 6  ;;  %vm558_vm0 = vcmask 130048   ;;  %vm1790_vm1 = vcmask 125952  }
   0xe   : > { %p163_p3 = scmp.lt.s32.totalorder %s1916_s14, 127 }
  0x10   : > { %s3756_s14 = smov (!%p163_p3, %s1916_s14), 127 }
  0x11   : > { %s1917_s15 = sshll.u32 %s3756_s14, 3  ;;  %s1919_s23 = sshll.u32 %s3756_s14, 2 }
  0x12   : > { %s2360_s18 = scalar_lea.vmem %s3643_s0, %s1917_s15  ;;  %s3312_s26 = scalar_lea.vmem %s3646_s3, %s1919_s23 }
  0x13   : > { %v174_v0 = vld [vmem:[%s2360_s18] sm:$0xff]  ;;  %v176_v1 = vld [vmem:[%s2360_s18 + $0x10] sm:$0xff]  ;;  %v175_v2 = vld [vmem:[%s2360_s18 + $0x8] sm:$0xff] }
  0x14   : > { %v302_v3 = vmul.f32 0.70710677, %v174_v0  ;;  %v304_v4 = vmul.f32 0.70710677, %v176_v1  ;;  %v303_v5 = vmul.f32 0.70710677, %v175_v2 }
  0x15   : > { %v177_v6 = vld [vmem:[%s2360_s18 + $0x18] sm:$0xff]  ;;  %v178_v7 = vld [vmem:[%s2360_s18 + $0x20] sm:$0xff]  ;;  %v179_v8 = vld [vmem:[%s2360_s18 + $0x28] sm:$0xff]  ;;  %v238_v23 = vmul.f32 0.5, %v174_v0  ;;  %v240_v27 = vmul.f32 0.5, %v176_v1  ;;  %v239_v31 = vmul.f32 0.5, %v175_v2 }
  0x16   : > { %2060 = verf.f32 %v302_v3  ;;  %v305_v9 = vmul.f32 0.70710677, %v177_v6  ;;  %v180_v10 = vld [vmem:[%s2360_s18 + $0x30] sm:$0xff]  ;;  %v2370_v11 = vld [vmem:[%s2360_s18 + $0x38] sm:$0xff]  ;;  %v306_v12 = vmul.f32 0.70710677, %v178_v7 }
  0x17   : > { %2062 = verf.f32 %v304_v4  ;;  %v307_v13 = vmul.f32 0.70710677, %v179_v8  ;;  %v2373_v14 = vld [vmem:[%s2360_s18 + $0x40] sm:$0xff]  ;;  %v308_v15 = vmul.f32 0.70710677, %v180_v10  ;;  %v2376_v16 = vld [vmem:[%s2360_s18 + $0x48] sm:$0xff] }
  0x18   : > { %2064 = verf.f32 %v303_v5  ;;  %v309_v17 = vmul.f32 0.70710677, %v2370_v11  ;;  %v310_v18 = vmul.f32 0.70710677, %v2373_v14  ;;  %v311_v19 = vmul.f32 0.70710677, %v2376_v16 }
  0x19   : > { %2066 = verf.f32 %v305_v9  ;;  %v2382_v20 = vld [vmem:[%s2360_s18 + $0x50] sm:$0xff]  ;;  %v2385_v21 = vld [vmem:[%s2360_s18 + $0x58] sm:$0xff]  ;;  %v2390_v25 = vld [vmem:[%s2360_s18 + $0x60] sm:$0xff]  ;;  %v241_v32 = vmul.f32 0.5, %v177_v6  ;;  %v242_v33 = vmul.f32 0.5, %v178_v7  ;;  %v243_v37 = vmul.f32 0.5, %v179_v8 }
  0x1a   : > { %2068 = verf.f32 %v306_v12  ;;  %v312_v22 = vmul.f32 0.70710677, %v2382_v20  ;;  %v313_v24 = vmul.f32 0.70710677, %v2385_v21  ;;  %v2393_v28 = vld [vmem:[%s2360_s18 + $0x68] sm:$0xff]  ;;  %v2396_v34 = vld [vmem:[%s2360_s18 + $0x70] sm:$0xff] }
  0x1b   : > { %2070 = verf.f32 %v307_v13  ;;  %v314_v38 = vmul.f32 0.70710677, %v2390_v25  ;;  %v2400_v39 = vld [vmem:[%s2360_s18 + $0x78] sm:$0xff]  ;;  %v315_v43 = vmul.f32 0.70710677, %v2393_v28  ;;  %v244_v47 = vmul.f32 0.5, %v180_v10 }
  0x1c   : > { %2072 = verf.f32 %v308_v15  ;;  %v316_v48 = vmul.f32 0.70710677, %v2396_v34  ;;  %v317_v53 = vmul.f32 0.70710677, %v2400_v39  ;;  %v2418_v58 = vld [vmem:[%s2360_s18 + $0x80] sm:$0xff]  ;;  %v2425_v63 = vld [vmem:[%s2360_s18 + $0x88] sm:$0xff] }
  0x1d   : > { %2074 = verf.f32 %v309_v17  ;;  %v245_v3 = vmul.f32 0.5, %v2370_v11  ;;  %v318_v6 = vmul.f32 0.70710677, %v2418_v58  ;;  %v246_v7 = vmul.f32 0.5, %v2373_v14  ;;  %v2440_v11 = vld [vmem:[%s2360_s18 + $0x90] sm:$0xff]  ;;  %v2443_v13 = vld [vmem:[%s2360_s18 + $0x98] sm:$0xff] }
  0x1e   : > { %2076 = verf.f32 %v310_v18  ;;  %v319_v8 = vmul.f32 0.70710677, %v2425_v63  ;;  %v247_v18 = vmul.f32 0.5, %v2376_v16 }
  0x1f   : > { %2078 = verf.f32 %v311_v19 }
  0x20   : > { %v2061_v26 = vpop.eup %2060  ;;  %2080 = verf.f32 %v312_v22 }
  0x21   : > { %v2063_v29 = vpop.eup %2062  ;;  %v430_v30 = vadd.f32 1.0, %v2061_v26  ;;  %2082 = verf.f32 %v313_v24  ;;  %v320_v24 = vmul.f32 0.70710677, %v2440_v11  ;;  %v321_v26 = vmul.f32 0.70710677, %v2443_v13 }
  0x22   : > { %v2065_v35 = vpop.eup %2064  ;;  %v432_v36 = vadd.f32 1.0, %v2063_v29  ;;  %2084 = verf.f32 %v314_v38 }
  0x23   : > { %v2067_v40 = vpop.eup %2066  ;;  %v2402_v41 = vmul.f32 %v430_v30, %v238_v23  ;;  %v431_v42 = vadd.f32 1.0, %v2065_v35  ;;  %2086 = verf.f32 %v315_v43  ;;  %v248_v23 = vmul.f32 0.5, %v2382_v20  ;;  %v2472_v43 = vld [vmem:[%s2360_s18 + $0xb0] sm:$0xff] }
  0x24   : > { %v2069_v44 = vpop.eup %2068  ;;  %v2405_v45 = vmul.f32 %v432_v36, %v240_v27  ;;  %v433_v46 = vadd.f32 1.0, %v2067_v40  ;;  %2088 = verf.f32 %v316_v48  ;;  %v2454_v27 = vld [vmem:[%s2360_s18 + $0xa0] sm:$0xff]  ;;  %v249_v35 = vmul.f32 0.5, %v2385_v21 }
  0x25   : > { %v2071_v49 = vpop.eup %2070  ;;  %v559_v50 = vsel %vm558_vm0, %v2402_v41, 0.0  ;;  %v2410_v51 = vmul.f32 %v431_v42, %v239_v31  ;;  %v434_v52 = vadd.f32 1.0, %v2069_v44  ;;  %2090 = verf.f32 %v317_v53  ;;  %v2461_v31 = vld [vmem:[%s2360_s18 + $0xa8] sm:$0xff] }
  0x26   : > { %v2073_v54 = vpop.eup %2072  ;;  %560 = vadd.xlane.f32.xlu0 %v559_v50  ;;  %v565_v55 = vsel %vm558_vm0, %v2405_v45, 0.0  ;;  %v2415_v56 = vmul.f32 %v433_v46, %v241_v32  ;;  %v435_v57 = vadd.f32 1.0, %v2071_v49  ;;  %2092 = verf.f32 %v318_v6 }
  0x27   : > { %v2075_v59 = vpop.eup %2074  ;;  %566 = vadd.xlane.f32.xlu1 %v565_v55  ;;  %v562_v60 = vsel %vm558_vm0, %v2410_v51, 0.0  ;;  %v2422_v61 = vmul.f32 %v434_v52, %v242_v33  ;;  %v436_v62 = vadd.f32 1.0, %v2073_v54  ;;  %2094 = verf.f32 %v319_v8  ;;  %v2484_v52 = vld [vmem:[%s2360_s18 + $0xb8] sm:$0xff] }
  0x28   : > { %v2077_v0 = vpop.eup %2076  ;;  %v568_v1 = vsel %vm558_vm0, %v2415_v56, 0.0  ;;  %v2429_v2 = vmul.f32 %v435_v57, %v243_v37  ;;  %v437_v4 = vadd.f32 1.0, %v2075_v59  ;;  %v322_v38 = vmul.f32 0.70710677, %v2454_v27 }
  0x29   : > { %v2079_v5 = vpop.eup %2078  ;;  %v571_v9 = vsel %vm558_vm0, %v2422_v61, 0.0  ;;  %v2437_v10 = vmul.f32 %v436_v62, %v244_v47  ;;  %v438_v12 = vadd.f32 1.0, %v2077_v0  ;;  %v250_v40 = vmul.f32 0.5, %v2390_v25  ;;  %v2494_v0 = vld [vmem:[%s2360_s18 + $0xc0] sm:$0xff] }
  0x2a   : > { %563 = vadd.xlane.f32.xlu0 %v562_v60  ;;  %v2081_v15 = vpop.eup %2080  ;;  %v574_v14 = vsel %vm558_vm0, %v2429_v2, 0.0  ;;  %v2447_v17 = vmul.f32 %v437_v4, %v245_v3  ;;  %v439_v19 = vadd.f32 1.0, %v2079_v5  ;;  %2096 = verf.f32 %v320_v24  ;;  %v2502_v5 = vld [vmem:[%s2360_s18 + $0xc8] sm:$0xff]  ;;  %v2520_v24 = vld [vmem:[%s2360_s18 + $0xd8] sm:$0xff] }
  0x2b   : > { %569 = vadd.xlane.f32.xlu1 %v568_v1  ;;  %v2083_v22 = vpop.eup %2082  ;;  %v577_v29 = vsel %vm558_vm0, %v2437_v10, 0.0  ;;  %v2458_v30 = vmul.f32 %v438_v12, %v246_v7  ;;  %v440_v16 = vadd.f32 1.0, %v2081_v15  ;;  %v323_v42 = vmul.f32 0.70710677, %v2461_v31 }
  0x2c   : > { %v2085_v32 = vpop.eup %2084  ;;  %v580_v20 = vsel %vm558_vm0, %v2447_v17, 0.0  ;;  %v2465_v33 = vmul.f32 %v439_v19, %v247_v18  ;;  %v441_v36 = vadd.f32 1.0, %v2083_v22  ;;  %2098 = verf.f32 %v321_v26 }
  0x2d   : > { %v2087_v37 = vpop.eup %2086  ;;  %v583_v44 = vsel %vm558_vm0, %v2458_v30, 0.0  ;;  %v2476_v46 = vmul.f32 %v440_v16, %v248_v23  ;;  %v442_v21 = vadd.f32 1.0, %v2085_v32  ;;  %v251_v25 = vmul.f32 0.5, %v2393_v28 }
  0x2e   : > { %572 = vadd.xlane.f32.xlu0 %v571_v9  ;;  %v2089_v47 = vpop.eup %2088  ;;  %v586_v48 = vsel %vm558_vm0, %v2465_v33, 0.0  ;;  %v2480_v49 = vmul.f32 %v441_v36, %v249_v35  ;;  %v443_v50 = vadd.f32 1.0, %v2087_v37  ;;  %2100 = verf.f32 %v322_v38  ;;  %v2530_v37 = vld [vmem:[%s2360_s18 + $0xe0] sm:$0xff] }
  0x2f   : > { %575 = vadd.xlane.f32.xlu1 %v574_v14  ;;  %v2091_v53 = vpop.eup %2090  ;;  %v324_v54 = vmul.f32 0.70710677, %v2472_v43  ;;  %v252_v55 = vmul.f32 0.5, %v2396_v34  ;;  %2102 = verf.f32 %v323_v42  ;;  %v589_v59 = vsel %vm558_vm0, %v2476_v46, 0.0  ;;  %v2512_v14 = vld [vmem:[%s2360_s18 + $0xd0] sm:$0xff] }
  0x30   : > { %v2093_v57 = vpop.eup %2092  ;;  %v2490_v60 = vmul.f32 %v442_v21, %v250_v40  ;;  %v444_v28 = vadd.f32 1.0, %v2089_v47  ;;  %v325_v62 = vmul.f32 0.70710677, %v2484_v52  ;;  %v592_v1 = vsel %vm558_vm0, %v2480_v49, 0.0  ;;  %v2538_v21 = vld [vmem:[%s2360_s18 + $0xe8] sm:$0xff] }
  0x31   : > { %v2498_v3 = vmul.f32 %v443_v50, %v251_v25  ;;  %v253_v34 = vmul.f32 0.5, %v2400_v39  ;;  %v445_v4 = vadd.f32 1.0, %v2091_v53  ;;  %v2095_v6 = vpop.eup %2094  ;;  %2104 = verf.f32 %v324_v54 }
  0x32   : > { %578 = vadd.xlane.f32.xlu0 %v577_v29  ;;  %v254_v7 = vmul.f32 0.5, %v2418_v58  ;;  %v446_v8 = vadd.f32 1.0, %v2093_v57  ;;  %v326_v9 = vmul.f32 0.70710677, %v2494_v0  ;;  %v595_v12 = vsel %vm558_vm0, %v2490_v60, 0.0 }
  0x33   : > { %581 = vadd.xlane.f32.xlu1 %v580_v20  ;;  %v2508_v15 = vmul.f32 %v444_v28, %v252_v55  ;;  %2106 = verf.f32 %v325_v62  ;;  %v327_v39 = vmul.f32 0.70710677, %v2502_v5  ;;  %v598_v19 = vsel %vm558_vm0, %v2498_v3, 0.0  ;;  %v2548_v55 = vld [vmem:[%s2360_s18 + $0xf0] sm:$0xff]  ;;  %v2556_v62 = vld [vmem:[%s2360_s18 + $0xf8] sm:$0xff] }
  0x34   : > { %v2097_v18 = vpop.eup %2096  ;;  %v2516_v22 = vmul.f32 %v445_v4, %v253_v34  ;;  %v255_v58 = vmul.f32 0.5, %v2425_v63  ;;  %v447_v23 = vadd.f32 1.0, %v2095_v6  ;;  %v2522_v29 = vmul.f32 %v446_v8, %v254_v7 }
  0x35   : > { %v256_v16 = vmul.f32 0.5, %v2440_v11  ;;  %2108 = verf.f32 %v326_v9  ;;  %v328_v32 = vmul.f32 0.70710677, %v2512_v14  ;;  %v601_v35 = vsel %vm558_vm0, %v2508_v15, 0.0  ;;  %v2566_v9 = vld [vmem:[%s2360_s18 + $0x100] sm:$0xff] }
  0x36   : > { %584 = vadd.xlane.f32.xlu0 %v583_v44  ;;  %v2099_v26 = vpop.eup %2098  ;;  %v448_v36 = vadd.f32 1.0, %v2097_v18  ;;  %2110 = verf.f32 %v327_v39  ;;  %v329_v63 = vmul.f32 0.70710677, %v2520_v24  ;;  %v604_v40 = vsel %vm558_vm0, %v2516_v22, 0.0 }
  0x37   : > { %587 = vadd.xlane.f32.xlu1 %v586_v48  ;;  %v2534_v11 = vmul.f32 %v447_v23, %v255_v58  ;;  %v257_v42 = vmul.f32 0.5, %v2443_v13  ;;  %v449_v44 = vadd.f32 1.0, %v2099_v26  ;;  %v607_v47 = vsel %vm558_vm0, %v2522_v29, 0.0  ;;  %v2574_v58 = vld [vmem:[%s2360_s18 + $0x108] sm:$0xff] }
  0x38   : > { %v2101_v20 = vpop.eup %2100  ;;  %v258_v48 = vmul.f32 0.5, %v2454_v27  ;;  %2112 = verf.f32 %v328_v32  ;;  %v330_v25 = vmul.f32 0.70710677, %v2530_v37  ;;  %v2544_v53 = vmul.f32 %v448_v36, %v256_v16  ;;  %v2584_v36 = vld [vmem:[%s2360_s18 + $0x110] sm:$0xff] }
  0x39   : > { %v2103_v38 = vpop.eup %2102  ;;  %v450_v54 = vadd.f32 1.0, %v2101_v20  ;;  %2114 = verf.f32 %v329_v63  ;;  %v331_v13 = vmul.f32 0.70710677, %v2538_v21  ;;  %v610_v57 = vsel %vm558_vm0, %v2534_v11, 0.0 }
  0x3a   : > { %590 = vadd.xlane.f32.xlu0 %v589_v59  ;;  %v2552_v59 = vmul.f32 %v449_v44, %v257_v42  ;;  %v259_v27 = vmul.f32 0.5, %v2461_v31  ;;  %v451_v28 = vadd.f32 1.0, %v2103_v38  ;;  %v260_v34 = vmul.f32 0.5, %v2472_v43  ;;  %v2592_v44 = vld [vmem:[%s2360_s18 + $0x118] sm:$0xff] }
  0x3b   : > { %593 = vadd.xlane.f32.xlu1 %v592_v1  ;;  %v2105_v50 = vpop.eup %2104  ;;  %2116 = verf.f32 %v330_v25  ;;  %v332_v6 = vmul.f32 0.70710677, %v2548_v55  ;;  %v613_v7 = vsel %vm558_vm0, %v2544_v53, 0.0  ;;  %v2562_v8 = vmul.f32 %v450_v54, %v258_v48  ;;  %v2599_v54 = vld [vmem:[%s2360_s18 + $0x120] sm:$0xff] }
  0x3c   : > { %v452_v4 = vadd.f32 1.0, %v2105_v50  ;;  %2118 = verf.f32 %v331_v13  ;;  %v333_v31 = vmul.f32 0.70710677, %v2556_v62  ;;  %v616_v39 = vsel %vm558_vm0, %v2552_v59, 0.0 }
  0x3d   : > { %v2107_v1 = vpop.eup %2106  ;;  %v2570_v43 = vmul.f32 %v451_v28, %v259_v27  ;;  %v261_v18 = vmul.f32 0.5, %v2484_v52  ;;  %v262_v16 = vmul.f32 0.5, %v2494_v0  ;;  %2120 = verf.f32 %v332_v6  ;;  %v2605_v27 = vld [vmem:[%s2360_s18 + $0x128] sm:$0xff] }
  0x3e   : > { %596 = vadd.xlane.f32.xlu0 %v595_v12  ;;  %v2576_v26 = vmul.f32 %v452_v4, %v260_v34  ;;  %v334_v32 = vmul.f32 0.70710677, %v2566_v9  ;;  %v619_v20 = vsel %vm558_vm0, %v2562_v8, 0.0  ;;  %2122 = verf.f32 %v333_v31 }
  0x3f   : > { %599 = vadd.xlane.f32.xlu1 %v598_v19  ;;  %v2109_v12 = vpop.eup %2108  ;;  %v453_v19 = vadd.f32 1.0, %v2107_v1  ;;  %v335_v52 = vmul.f32 0.70710677, %v2574_v58  ;;  %v622_v38 = vsel %vm558_vm0, %v2570_v43, 0.0  ;;  %v263_v0 = vmul.f32 0.5, %v2502_v5 }
  0x40   : > { %v2111_v23 = vpop.eup %2110  ;;  %v625_v48 = vsel %vm558_vm0, %v2576_v26, 0.0  ;;  %v264_v25 = vmul.f32 0.5, %v2512_v14  ;;  %2124 = verf.f32 %v334_v32  ;;  %v336_v50 = vmul.f32 0.70710677, %v2584_v36 }
  0x41   : > { %v455_v42 = vadd.f32 1.0, %v2111_v23  ;;  %2126 = verf.f32 %v335_v52  ;;  %v337_v5 = vmul.f32 0.70710677, %v2592_v44  ;;  %v265_v34 = vmul.f32 0.5, %v2520_v24  ;;  %v2620_v24 = vld [vmem:[%s2360_s18 + $0x130] sm:$0xff] }
  0x42   : > { %602 = vadd.xlane.f32.xlu0 %v601_v35  ;;  %v454_v35 = vadd.f32 1.0, %v2109_v12  ;;  %v2113_v63 = vpop.eup %2112  ;;  %v266_v31 = vmul.f32 0.5, %v2530_v37  ;;  %2128 = verf.f32 %v336_v50  ;;  %v339_v12 = vmul.f32 0.70710677, %v2605_v27 }
  0x43   : > { %605 = vadd.xlane.f32.xlu1 %v604_v40  ;;  %v2588_v40 = vmul.f32 %v453_v19, %v261_v18  ;;  %v2609_v14 = vmul.f32 %v455_v42, %v263_v0  ;;  %2130 = verf.f32 %v337_v5  ;;  %v267_v37 = vmul.f32 0.5, %v2538_v21  ;;  %v2633_v0 = vld [vmem:[%s2360_s18 + $0x140] sm:$0xff] }
  0x44   : > { %v2601_v13 = vmul.f32 %v454_v35, %v262_v16  ;;  %v2628_v35 = vld [vmem:[%s2360_s18 + $0x138] sm:$0xff]  ;;  %v269_v5 = vmul.f32 0.5, %v2556_v62 }
  0x45   : > { %v628_v1 = vsel %vm558_vm0, %v2588_v40, 0.0  ;;  %v634_v16 = vsel %vm558_vm0, %v2609_v14, 0.0 }
  0x46   : > { %608 = vadd.xlane.f32.xlu0 %v607_v47  ;;  %v2115_v47 = vpop.eup %2114 }
  0x47   : > { %611 = vadd.xlane.f32.xlu1 %v610_v57  ;;  %v456_v57 = vadd.f32 1.0, %v2113_v63  ;;  %v2117_v28 = vpop.eup %2116  ;;  %v457_v4 = vadd.f32 1.0, %v2115_v47  ;;  %v268_v63 = vmul.f32 0.5, %v2548_v55 }
  0x48   : > { %v2119_v6 = vpop.eup %2118  ;;  %v458_v19 = vadd.f32 1.0, %v2117_v28 }
  0x49   : > { %v2617_v18 = vmul.f32 %v456_v57, %v264_v25  ;;  %v2121_v23 = vpop.eup %2120  ;;  %v2624_v32 = vmul.f32 %v457_v4, %v265_v34  ;;  %v2641_v25 = vld [vmem:[%s2360_s18 + $0x148] sm:$0xff]  ;;  %v342_v34 = vmul.f32 0.70710677, %v2633_v0  ;;  %v270_v4 = vmul.f32 0.5, %v2566_v9 }
  0x4a   : > { %614 = vadd.xlane.f32.xlu0 %v613_v7  ;;  %v338_v7 = vmul.f32 0.70710677, %v2599_v54  ;;  %v2123_v52 = vpop.eup %2122  ;;  %v2637_v47 = vmul.f32 %v458_v19, %v266_v31  ;;  %v460_v21 = vadd.f32 1.0, %v2121_v23  ;;  %v271_v9 = vmul.f32 0.5, %v2574_v58 }
  0x4b   : > { %617 = vadd.xlane.f32.xlu1 %v616_v39  ;;  %v631_v39 = vsel %vm558_vm0, %v2601_v13, 0.0  ;;  %v637_v42 = vsel %vm558_vm0, %v2617_v18, 0.0  ;;  %v2125_v50 = vpop.eup %2124  ;;  %v640_v55 = vsel %vm558_vm0, %v2624_v32, 0.0  ;;  %v461_v28 = vadd.f32 1.0, %v2123_v52 }
  0x4c   : > { %2132 = verf.f32 %v338_v7  ;;  %v2652_v7 = vld [vmem:[%s2360_s18 + $0x150] sm:$0xff]  ;;  %v643_v31 = vsel %vm558_vm0, %v2637_v47, 0.0  ;;  %v462_v62 = vadd.f32 1.0, %v2125_v50  ;;  %v2674_v50 = vld [vmem:[%s2360_s18 + $0x160] sm:$0xff] }
  0x4d   : > { %2134 = verf.f32 %v339_v12  ;;  %v2656_v12 = vmul.f32 %v460_v21, %v268_v63  ;;  %v2660_v23 = vmul.f32 %v461_v28, %v269_v5  ;;  %v344_v52 = vmul.f32 0.70710677, %v2652_v7 }
  0x4e   : > { %620 = vadd.xlane.f32.xlu0 %v619_v20  ;;  %v459_v20 = vadd.f32 1.0, %v2119_v6  ;;  %v343_v6 = vmul.f32 0.70710677, %v2641_v25  ;;  %v272_v63 = vmul.f32 0.5, %v2584_v36  ;;  %v2670_v21 = vmul.f32 %v462_v62, %v270_v4 }
  0x4f   : > { %623 = vadd.xlane.f32.xlu1 %v622_v38  ;;  %v340_v38 = vmul.f32 0.70710677, %v2620_v24  ;;  %v652_v5 = vsel %vm558_vm0, %v2660_v23, 0.0  ;;  %v273_v36 = vmul.f32 0.5, %v2592_v44  ;;  %v274_v4 = vmul.f32 0.5, %v2599_v54 }
  0x50   : > { %v2645_v57 = vmul.f32 %v459_v20, %v267_v37  ;;  %v2664_v37 = vld [vmem:[%s2360_s18 + $0x158] sm:$0xff]  ;;  %3683 = vst [vmem:[#allocation2_spill] sm:$0xff] %v2670_v21  ;;  %v655_v62 = vsel %vm558_vm0, %v2670_v21, 0.0  ;;  %v275_v54 = vmul.f32 0.5, %v2605_v27 }
  0x51   : > { %2136 = verf.f32 %v340_v38 }
  0x52   : > { %626 = vadd.xlane.f32.xlu0 %v625_v48  ;;  %v341_v48 = vmul.f32 0.70710677, %v2628_v35  ;;  %v646_v19 = vsel %vm558_vm0, %v2645_v57, 0.0 }
  0x53   : > { %629 = vadd.xlane.f32.xlu1 %v628_v1  ;;  %v2127_v1 = vpop.eup %2126 }
  0x54   : > { %2138 = verf.f32 %v341_v48  ;;  %v345_v48 = vmul.f32 0.70710677, %v2664_v37 }
  0x55   : > { %2140 = verf.f32 %v342_v34  ;;  %v2682_v34 = vld [vmem:[%s2360_s18 + $0x168] sm:$0xff] }
  0x56   : > { %632 = vadd.xlane.f32.xlu0 %v631_v39  ;;  %v2129_v39 = vpop.eup %2128  ;;  %2142 = verf.f32 %v343_v6  ;;  %v347_v44 = vmul.f32 0.70710677, %v2682_v34 }
  0x57   : > { %635 = vadd.xlane.f32.xlu1 %v634_v16  ;;  %v463_v16 = vadd.f32 1.0, %v2127_v1  ;;  %v2131_v20 = vpop.eup %2130  ;;  %v464_v58 = vadd.f32 1.0, %v2129_v39  ;;  %2144 = verf.f32 %v344_v52 }
  0x58   : > { %v2133_v38 = vpop.eup %2132  ;;  %v465_v1 = vadd.f32 1.0, %v2131_v20  ;;  %2146 = verf.f32 %v345_v48 }
  0x59   : > { %v2678_v28 = vmul.f32 %v463_v16, %v271_v9  ;;  %v466_v6 = vadd.f32 1.0, %v2133_v38  ;;  %v2688_v39 = vmul.f32 %v464_v58, %v272_v63  ;;  %v2700_v38 = vld [vmem:[%s2360_s18 + $0x178] sm:$0xff]  ;;  %v276_v58 = vmul.f32 0.5, %v2620_v24 }
  0x5a   : > { %638 = vadd.xlane.f32.xlu0 %v637_v42  ;;  %v649_v42 = vsel %vm558_vm0, %v2656_v12, 0.0  ;;  %v2696_v20 = vmul.f32 %v465_v1, %v273_v36  ;;  %v349_v27 = vmul.f32 0.70710677, %v2700_v38 }
  0x5b   : > { %641 = vadd.xlane.f32.xlu1 %v640_v55  ;;  %v2135_v55 = vpop.eup %2134  ;;  %3684 = vst [vmem:[#allocation3_spill] sm:$0xff] %v2678_v28  ;;  %3685 = vst [vmem:[#allocation4_spill] sm:$0xff] %v2688_v39  ;;  %v658_v16 = vsel %vm558_vm0, %v2678_v28, 0.0  ;;  %v2702_v63 = vmul.f32 %v466_v6, %v274_v4  ;;  %v661_v36 = vsel %vm558_vm0, %v2688_v39, 0.0  ;;  %v277_v6 = vmul.f32 0.5, %v2628_v35 }
  0x5c   : > { %v2137_v9 = vpop.eup %2136  ;;  %3686 = vst [vmem:[#allocation5_spill] sm:$0xff] %v2696_v20  ;;  %v467_v52 = vadd.f32 1.0, %v2135_v55  ;;  %v2710_v55 = vld [vmem:[%s2360_s18 + $0x180] sm:$0xff]  ;;  %v664_v4 = vsel %vm558_vm0, %v2696_v20, 0.0 }
  0x5d   : > { %3687 = vst [vmem:[#allocation6_spill] sm:$0xff] %v2702_v63  ;;  %v468_v1 = vadd.f32 1.0, %v2137_v9  ;;  %v278_v9 = vmul.f32 0.5, %v2633_v0  ;;  %v350_v39 = vmul.f32 0.70710677, %v2710_v55  ;;  %v279_v0 = vmul.f32 0.5, %v2641_v25 }
  0x5e   : > { %644 = vadd.xlane.f32.xlu0 %v643_v31  ;;  %v346_v31 = vmul.f32 0.70710677, %v2674_v50  ;;  %v2714_v24 = vmul.f32 %v467_v52, %v275_v54  ;;  %v2728_v52 = vld [vmem:[%s2360_s18 + $0x190] sm:$0xff] }
  0x5f   : > { %647 = vadd.xlane.f32.xlu1 %v646_v19  ;;  %v2692_v19 = vld [vmem:[%s2360_s18 + $0x170] sm:$0xff]  ;;  %v2724_v20 = vmul.f32 %v468_v1, %v276_v58  ;;  %v280_v58 = vmul.f32 0.5, %v2652_v7  ;;  %v352_v1 = vmul.f32 0.70710677, %v2728_v52 }
  0x60   : > { %2148 = verf.f32 %v346_v31  ;;  %v348_v48 = vmul.f32 0.70710677, %v2692_v19  ;;  %3688 = vst [vmem:[#allocation7_spill] sm:$0xff] %v2714_v24 }
  0x61   : > { %2150 = verf.f32 %v347_v44  ;;  %v667_v44 = vsel %vm558_vm0, %v2702_v63, 0.0  ;;  %3689 = vst [vmem:[#allocation8_spill] sm:$0xff] %v2724_v20  ;;  %v2736_v63 = vld [vmem:[%s2360_s18 + $0x198] sm:$0xff] }
  0x62   : > { %650 = vadd.xlane.f32.xlu0 %v649_v42  ;;  %v2139_v42 = vpop.eup %2138  ;;  %2152 = verf.f32 %v348_v48  ;;  %v353_v25 = vmul.f32 0.70710677, %v2736_v63 }
  0x63   : > { %653 = vadd.xlane.f32.xlu1 %v652_v5  ;;  %v2141_v5 = vpop.eup %2140  ;;  %v469_v31 = vadd.f32 1.0, %v2139_v42  ;;  %2154 = verf.f32 %v349_v27  ;;  %v670_v42 = vsel %vm558_vm0, %v2714_v24, 0.0  ;;  %v673_v27 = vsel %vm558_vm0, %v2724_v20, 0.0  ;;  %v2779_v24 = vld [vmem:[%s2360_s18 + $0x1c0] sm:$0xff] }
  0x64   : > { %v470_v54 = vadd.f32 1.0, %v2141_v5  ;;  %2156 = verf.f32 %v350_v39 }
  0x66   : > { %656 = vadd.xlane.f32.xlu0 %v655_v62  ;;  %v2143_v62 = vpop.eup %2142 }
  0x67   : > { %659 = vadd.xlane.f32.xlu1 %v658_v16  ;;  %v2718_v16 = vld [vmem:[%s2360_s18 + $0x188] sm:$0xff]  ;;  %v2145_v28 = vpop.eup %2144  ;;  %v471_v48 = vadd.f32 1.0, %v2143_v62  ;;  %v2746_v62 = vld [vmem:[%s2360_s18 + $0x1a0] sm:$0xff] }
  0x68   : > { %v351_v35 = vmul.f32 0.70710677, %v2718_v16  ;;  %v472_v5 = vadd.f32 1.0, %v2145_v28  ;;  %v281_v28 = vmul.f32 0.5, %v2664_v37 }
  0x69   : > { %v2750_v7 = vmul.f32 %v471_v48, %v279_v0 }
  0x6a   : > { %662 = vadd.xlane.f32.xlu0 %v661_v36  ;;  %v2732_v36 = vmul.f32 %v469_v31, %v277_v6  ;;  %v2742_v6 = vmul.f32 %v470_v54, %v278_v9  ;;  %2158 = verf.f32 %v351_v35  ;;  %v2756_v9 = vmul.f32 %v472_v5, %v280_v58 }
  0x6b   : > { %665 = vadd.xlane.f32.xlu1 %v664_v4  ;;  %v2147_v4 = vpop.eup %2146  ;;  %3692 = vst [vmem:[#allocation11_spill] sm:$0xff] %v2750_v7  ;;  %v282_v54 = vmul.f32 0.5, %v2674_v50  ;;  %2160 = verf.f32 %v352_v1  ;;  %v354_v35 = vmul.f32 0.70710677, %v2746_v62  ;;  %v682_v58 = vsel %vm558_vm0, %v2750_v7, 0.0 }
  0x6c   : > { %3690 = vst [vmem:[#allocation9_spill] sm:$0xff] %v2732_v36  ;;  %3691 = vst [vmem:[#allocation10_spill] sm:$0xff] %v2742_v6  ;;  %v2149_v31 = vpop.eup %2148  ;;  %v473_v39 = vadd.f32 1.0, %v2147_v4  ;;  %v679_v0 = vsel %vm558_vm0, %v2742_v6, 0.0  ;;  %2162 = verf.f32 %v353_v25  ;;  %v2764_v4 = vld [vmem:[%s2360_s18 + $0x1b0] sm:$0xff]  ;;  %v283_v50 = vmul.f32 0.5, %v2682_v34 }
  0x6d   : > { %v2151_v20 = vpop.eup %2150  ;;  %3693 = vst [vmem:[#allocation12_spill] sm:$0xff] %v2756_v9  ;;  %v474_v48 = vadd.f32 1.0, %v2149_v31  ;;  %v685_v25 = vsel %vm558_vm0, %v2756_v9, 0.0  ;;  %v284_v31 = vmul.f32 0.5, %v2692_v19  ;;  %2164 = verf.f32 %v354_v35 }
  0x6e   : > { %668 = vadd.xlane.f32.xlu0 %v667_v44  ;;  %v676_v44 = vsel %vm558_vm0, %v2732_v36, 0.0  ;;  %v2768_v5 = vmul.f32 %v473_v39, %v281_v28  ;;  %v475_v1 = vadd.f32 1.0, %v2151_v20  ;;  %v356_v36 = vmul.f32 0.70710677, %v2764_v4  ;;  %v2785_v20 = vld [vmem:[%s2360_s18 + $0x1c8] sm:$0xff] }
  0x6f   : > { %671 = vadd.xlane.f32.xlu1 %v670_v42  ;;  %v2754_v42 = vld [vmem:[%s2360_s18 + $0x1a8] sm:$0xff]  ;;  %v2781_v28 = vmul.f32 %v474_v48, %v282_v54  ;;  %v285_v35 = vmul.f32 0.5, %v2700_v38  ;;  %v358_v54 = vmul.f32 0.70710677, %v2779_v24  ;;  %v286_v48 = vmul.f32 0.5, %v2710_v55  ;;  %v2800_v38 = vld [vmem:[%s2360_s18 + $0x1d0] sm:$0xff] }
  0x70   : > { %v355_v37 = vmul.f32 0.70710677, %v2754_v42  ;;  %3694 = vst [vmem:[#allocation13_spill] sm:$0xff] %v2768_v5  ;;  %v688_v9 = vsel %vm558_vm0, %v2768_v5, 0.0  ;;  %v2789_v19 = vmul.f32 %v475_v1, %v283_v50  ;;  %v287_v55 = vmul.f32 0.5, %v2718_v16  ;;  %v2844_v5 = vld [vmem:[%s2360_s18 + $0x1f8] sm:$0xff] }
  0x71   : > { %3695 = vst [vmem:[#allocation14_spill] sm:$0xff] %v2781_v28 }
  0x72   : > { %674 = vadd.xlane.f32.xlu0 %v673_v27  ;;  %v2153_v27 = vpop.eup %2152  ;;  %2166 = verf.f32 %v355_v37  ;;  %3696 = vst [vmem:[#allocation15_spill] sm:$0xff] %v2789_v19  ;;  %v359_v37 = vmul.f32 0.70710677, %v2785_v20  ;;  %v694_v1 = vsel %vm558_vm0, %v2789_v19, 0.0 }
  0x73   : > { %677 = vadd.xlane.f32.xlu1 %v676_v44  ;;  %v2772_v44 = vld [vmem:[%s2360_s18 + $0x1b8] sm:$0xff]  ;;  %v2155_v6 = vpop.eup %2154  ;;  %v476_v39 = vadd.f32 1.0, %v2153_v27  ;;  %2168 = verf.f32 %v356_v36  ;;  %v691_v27 = vsel %vm558_vm0, %v2781_v28, 0.0 }
  0x74   : > { %v357_v34 = vmul.f32 0.70710677, %v2772_v44  ;;  %v477_v7 = vadd.f32 1.0, %v2155_v6 }
  0x76   : > { %680 = vadd.xlane.f32.xlu0 %v679_v0  ;;  %v2157_v0 = vpop.eup %2156  ;;  %2170 = verf.f32 %v357_v34  ;;  %v2813_v34 = vld [vmem:[%s2360_s18 + $0x1e0] sm:$0xff] }
  0x77   : > { %683 = vadd.xlane.f32.xlu1 %v682_v58  ;;  %v2159_v21 = vpop.eup %2158  ;;  %v2797_v58 = vmul.f32 %v476_v39, %v284_v31  ;;  %v478_v50 = vadd.f32 1.0, %v2157_v0  ;;  %2172 = verf.f32 %v358_v54  ;;  %v288_v31 = vmul.f32 0.5, %v2728_v52 }
  0x78   : > { %v2161_v6 = vpop.eup %2160  ;;  %v479_v36 = vadd.f32 1.0, %v2159_v21  ;;  %2174 = verf.f32 %v359_v37  ;;  %v360_v39 = vmul.f32 0.70710677, %v2800_v38 }
  0x79   : > { %3697 = vst [vmem:[#allocation16_spill] sm:$0xff] %v2797_v58  ;;  %v2163_v28 = vpop.eup %2162  ;;  %v2817_v0 = vmul.f32 %v478_v50, %v286_v48  ;;  %v480_v16 = vadd.f32 1.0, %v2161_v6  ;;  %v290_v48 = vmul.f32 0.5, %v2746_v62  ;;  %v291_v62 = vmul.f32 0.5, %v2754_v42 }
  0x7a   : > { %686 = vadd.xlane.f32.xlu0 %v685_v25  ;;  %v2804_v25 = vmul.f32 %v477_v7, %v285_v35  ;;  %v697_v7 = vsel %vm558_vm0, %v2797_v58, 0.0  ;;  %v2821_v35 = vld [vmem:[%s2360_s18 + $0x1e8] sm:$0xff]  ;;  %v2165_v54 = vpop.eup %2164  ;;  %v2825_v37 = vmul.f32 %v479_v36, %v287_v55  ;;  %v362_v58 = vmul.f32 0.70710677, %v2813_v34 }
  0x7b   : > { %689 = vadd.xlane.f32.xlu1 %v688_v9  ;;  %v2808_v9 = vld [vmem:[%s2360_s18 + $0x1d8] sm:$0xff]  ;;  %2176 = verf.f32 %v360_v39  ;;  %v363_v50 = vmul.f32 0.70710677, %v2821_v35  ;;  %v703_v6 = vsel %vm558_vm0, %v2817_v0, 0.0  ;;  %v482_v55 = vadd.f32 1.0, %v2165_v54 }
  0x7c   : > { %3698 = vst [vmem:[#allocation17_spill] sm:$0xff] %v2804_v25  ;;  %v361_v21 = vmul.f32 0.70710677, %v2808_v9  ;;  %v700_v52 = vsel %vm558_vm0, %v2804_v25, 0.0  ;;  %v2167_v19 = vpop.eup %2166  ;;  %v2833_v25 = vmul.f32 %v480_v16, %v288_v31  ;;  %v706_v36 = vsel %vm558_vm0, %v2825_v37, 0.0 }
  0x7d   : > { %v483_v39 = vadd.f32 1.0, %v2167_v19  ;;  %v292_v31 = vmul.f32 0.5, %v2764_v4  ;;  %v365_v42 = vmul.f32 0.70710677, %v2844_v5  ;;  %v293_v4 = vmul.f32 0.5, %v2772_v44 }
  0x7e   : > { %692 = vadd.xlane.f32.xlu0 %v691_v27  ;;  %v289_v27 = vmul.f32 0.5, %v2736_v63  ;;  %3699 = vst [vmem:[#allocation18_spill] sm:$0xff] %v2833_v25  ;;  %2178 = verf.f32 %v361_v21  ;;  %v2836_v63 = vld [vmem:[%s2360_s18 + $0x1f0] sm:$0xff]  ;;  %v709_v54 = vsel %vm558_vm0, %v2833_v25, 0.0  ;;  %v295_v44 = vmul.f32 0.5, %v2785_v20 }
  0x7f   : > { %695 = vadd.xlane.f32.xlu1 %v694_v1  ;;  %v481_v1 = vadd.f32 1.0, %v2163_v28  ;;  %v2169_v28 = vpop.eup %2168  ;;  %2180 = verf.f32 %v362_v58  ;;  %v364_v16 = vmul.f32 0.70710677, %v2836_v63  ;;  %v297_v20 = vmul.f32 0.5, %v2808_v9 }
  0x80   : > { %2182 = verf.f32 %v363_v50 }
  0x81   : > { %2184 = verf.f32 %v364_v16 }
  0x82   : > { %698 = vadd.xlane.f32.xlu0 %v697_v7  ;;  %v2840_v7 = vmul.f32 %v481_v1, %v289_v27  ;;  %v2850_v27 = vmul.f32 %v482_v55, %v290_v48  ;;  %v484_v1 = vadd.f32 1.0, %v2169_v28  ;;  %2186 = verf.f32 %v365_v42 }
  0x83   : > { %701 = vadd.xlane.f32.xlu1 %v700_v52  ;;  %v2171_v52 = vpop.eup %2170 }
  0x84   : > { %v2173_v21 = vpop.eup %2172  ;;  %v712_v58 = vsel %vm558_vm0, %v2840_v7, 0.0  ;;  %v485_v50 = vadd.f32 1.0, %v2171_v52  ;;  %v715_v48 = vsel %vm558_vm0, %v2850_v27, 0.0  ;;  %v2861_v55 = vmul.f32 %v484_v1, %v292_v31 }
  0x85   : > { %v2175_v19 = vpop.eup %2174  ;;  %v486_v28 = vadd.f32 1.0, %v2173_v21  ;;  %v296_v21 = vmul.f32 0.5, %v2800_v38 }
  0x86   : > { %704 = vadd.xlane.f32.xlu0 %v703_v6  ;;  %v2855_v6 = vmul.f32 %v483_v39, %v291_v62  ;;  %v2177_v25 = vpop.eup %2176  ;;  %v2865_v39 = vmul.f32 %v485_v50, %v293_v4  ;;  %v487_v52 = vadd.f32 1.0, %v2175_v19  ;;  %v721_v16 = vsel %vm558_vm0, %v2861_v55, 0.0 }
  0x87   : > { %707 = vadd.xlane.f32.xlu1 %v706_v36  ;;  %v294_v36 = vmul.f32 0.5, %v2779_v24  ;;  %v488_v1 = vadd.f32 1.0, %v2177_v25 }
  0x88   : > { %v718_v62 = vsel %vm558_vm0, %v2855_v6, 0.0  ;;  %v2875_v4 = vmul.f32 %v487_v52, %v295_v44  ;;  %v299_v44 = vmul.f32 0.5, %v2821_v35 }
  0x89   : > { %v2870_v31 = vmul.f32 %v486_v28, %v294_v36  ;;  %v298_v36 = vmul.f32 0.5, %v2813_v34  ;;  %v300_v34 = vmul.f32 0.5, %v2836_v63 }
  0x8a   : > { %710 = vadd.xlane.f32.xlu0 %v709_v54  ;;  %v2179_v54 = vpop.eup %2178  ;;  %v730_v28 = vsel %vm558_vm0, %v2875_v4, 0.0 }
  0x8b   : > { %713 = vadd.xlane.f32.xlu1 %v712_v58  ;;  %v2181_v24 = vpop.eup %2180  ;;  %v724_v58 = vsel %vm558_vm0, %v2865_v39, 0.0  ;;  %v489_v19 = vadd.f32 1.0, %v2179_v54  ;;  %v727_v50 = vsel %vm558_vm0, %v2870_v31, 0.0 }
  0x8c   : > { %v2183_v42 = vpop.eup %2182  ;;  %v490_v38 = vadd.f32 1.0, %v2181_v24 }
  0x8d   : > { %v2185_v25 = vpop.eup %2184  ;;  %v491_v9 = vadd.f32 1.0, %v2183_v42 }
  0x8e   : > { %716 = vadd.xlane.f32.xlu0 %v715_v48  ;;  %v2880_v48 = vmul.f32 %v488_v1, %v296_v21  ;;  %v2187_v52 = vpop.eup %2186  ;;  %v492_v24 = vadd.f32 1.0, %v2185_v25 }
  0x8f   : > { %719 = vadd.xlane.f32.xlu1 %v718_v62  ;;  %v2885_v62 = vmul.f32 %v489_v19, %v297_v20  ;;  %v2895_v1 = vmul.f32 %v491_v9, %v299_v44  ;;  %v493_v35 = vadd.f32 1.0, %v2187_v52 }
  0x90   : > { %v733_v54 = vsel %vm558_vm0, %v2880_v48, 0.0  ;;  %v2900_v20 = vmul.f32 %v492_v24, %v300_v34 }
  0x91   : > { %v736_v21 = vsel %vm558_vm0, %v2885_v62, 0.0  ;;  %v742_v19 = vsel %vm558_vm0, %v2895_v1, 0.0 }
  0x92   : > { %722 = vadd.xlane.f32.xlu0 %v721_v16  ;;  %v2890_v16 = vmul.f32 %v490_v38, %v298_v36 }
  0x93   : > { %725 = vadd.xlane.f32.xlu1 %v724_v58  ;;  %v301_v58 = vmul.f32 0.5, %v2844_v5 }
  0x94   : > { %v739_v42 = vsel %vm558_vm0, %v2890_v16, 0.0 }
  0x95   : > { %v2904_v63 = vmul.f32 %v493_v35, %v301_v58 }
  0x96   : > { %728 = vadd.xlane.f32.xlu0 %v727_v50  ;;  %v745_v50 = vsel %vm558_vm0, %v2900_v20, 0.0 }
  0x97   : > { %731 = vadd.xlane.f32.xlu1 %v730_v28  ;;  %v748_v5 = vsel %vm558_vm0, %v2904_v63, 0.0 }
  0x9a   : > { %734 = vadd.xlane.f32.xlu0 %v733_v54 }
  0x9b   : > { %737 = vadd.xlane.f32.xlu1 %v736_v21 }
  0x9e   : > { %740 = vadd.xlane.f32.xlu0 %v739_v42 }
  0x9f   : > { %743 = vadd.xlane.f32.xlu1 %v742_v19 }
  0xa2   : > { %746 = vadd.xlane.f32.xlu0 %v745_v50 }
  0xa3   : > { %749 = vadd.xlane.f32.xlu1 %v748_v5 }
  0xb3   : > { %v561_v36 = vpop.xlane.xlu0 %560 }
  0xb4   : > { %v752_v38 = vmul.f32 0.0625, %v561_v36  ;;  %v567_v25 = vpop.xlane.xlu1 %566 }
  0xb5   : > { %v754_v28 = vmul.f32 0.0625, %v567_v25 }
  0xb6   : > { %v2911_v44 = vsub.f32 %v2402_v41, %v752_v38 }
  0xb7   : > { %v2914_v9 = vsub.f32 %v2405_v45, %v754_v28  ;;  %v564_v52 = vpop.xlane.xlu0 %563 }
  0xb8   : > { %v753_v54 = vmul.f32 0.0625, %v564_v52  ;;  %v570_v34 = vpop.xlane.xlu1 %569  ;;  %v880_v24 = vmul.f32 %v2911_v44, %v2911_v44 }
  0xb9   : > { %v755_v21 = vmul.f32 0.0625, %v570_v34  ;;  %v882_v58 = vmul.f32 %v2914_v9, %v2914_v9 }
  0xba   : > { %v2921_v35 = vsub.f32 %v2410_v51, %v753_v54  ;;  %v944_v42 = vsel %vm558_vm0, %v880_v24, 0.0 }
  0xbb   : > { %v2925_v41 = vsub.f32 %v2415_v56, %v755_v21  ;;  %945 = vadd.xlane.f32.xlu0 %v944_v42  ;;  %v573_v45 = vpop.xlane.xlu0 %572  ;;  %v950_v5 = vsel %vm558_vm0, %v882_v58, 0.0 }
  0xbc   : > { %v756_v19 = vmul.f32 0.0625, %v573_v45  ;;  %v576_v50 = vpop.xlane.xlu1 %575  ;;  %v881_v36 = vmul.f32 %v2921_v35, %v2921_v35 }
  0xbd   : > { %v757_v38 = vmul.f32 0.0625, %v576_v50  ;;  %v883_v25 = vmul.f32 %v2925_v41, %v2925_v41 }
  0xbe   : > { %v2933_v51 = vsub.f32 %v2422_v61, %v756_v19  ;;  %v947_v28 = vsel %vm558_vm0, %v881_v36, 0.0 }
  0xbf   : > { %v2937_v56 = vsub.f32 %v2429_v2, %v757_v38  ;;  %951 = vadd.xlane.f32.xlu0 %v950_v5  ;;  %948 = vadd.xlane.f32.xlu1 %v947_v28  ;;  %v579_v52 = vpop.xlane.xlu0 %578  ;;  %v953_v24 = vsel %vm558_vm0, %v883_v25, 0.0 }
  0xc0   : > { %v758_v54 = vmul.f32 0.0625, %v579_v52  ;;  %v582_v34 = vpop.xlane.xlu1 %581  ;;  %v884_v21 = vmul.f32 %v2933_v51, %v2933_v51 }
  0xc1   : > { %v759_v58 = vmul.f32 0.0625, %v582_v34  ;;  %v885_v61 = vmul.f32 %v2937_v56, %v2937_v56 }
  0xc2   : > { %v2945_v42 = vsub.f32 %v2437_v10, %v758_v54  ;;  %v956_v2 = vsel %vm558_vm0, %v884_v21, 0.0 }
  0xc3   : > { %v2949_v45 = vsub.f32 %v2447_v17, %v759_v58  ;;  %954 = vadd.xlane.f32.xlu1 %v953_v24  ;;  %957 = vadd.xlane.f32.xlu0 %v956_v2  ;;  %v585_v19 = vpop.xlane.xlu0 %584  ;;  %v959_v36 = vsel %vm558_vm0, %v885_v61, 0.0 }
  0xc4   : > { %v760_v50 = vmul.f32 0.0625, %v585_v19  ;;  %v588_v5 = vpop.xlane.xlu1 %587  ;;  %v886_v38 = vmul.f32 %v2945_v42, %v2945_v42 }
  0xc5   : > { %v761_v25 = vmul.f32 0.0625, %v588_v5  ;;  %v887_v10 = vmul.f32 %v2949_v45, %v2949_v45 }
  0xc6   : > { %v2957_v28 = vsub.f32 %v2458_v30, %v760_v50  ;;  %v962_v17 = vsel %vm558_vm0, %v886_v38, 0.0 }
  0xc7   : > { %v2961_v52 = vsub.f32 %v2465_v33, %v761_v25  ;;  %960 = vadd.xlane.f32.xlu1 %v959_v36  ;;  %963 = vadd.xlane.f32.xlu0 %v962_v17  ;;  %v591_v54 = vpop.xlane.xlu0 %590  ;;  %v965_v21 = vsel %vm558_vm0, %v887_v10, 0.0 }
  0xc8   : > { %v762_v34 = vmul.f32 0.0625, %v591_v54  ;;  %v594_v24 = vpop.xlane.xlu1 %593  ;;  %v888_v58 = vmul.f32 %v2957_v28, %v2957_v28 }
  0xc9   : > { %v763_v61 = vmul.f32 0.0625, %v594_v24  ;;  %v889_v30 = vmul.f32 %v2961_v52, %v2961_v52 }
  0xca   : > { %v2969_v2 = vsub.f32 %v2476_v46, %v762_v34  ;;  %v968_v33 = vsel %vm558_vm0, %v888_v58, 0.0 }
  0xcb   : > { %v2973_v19 = vsub.f32 %v2480_v49, %v763_v61  ;;  %966 = vadd.xlane.f32.xlu1 %v965_v21  ;;  %969 = vadd.xlane.f32.xlu0 %v968_v33  ;;  %v597_v50 = vpop.xlane.xlu0 %596  ;;  %v971_v38 = vsel %vm558_vm0, %v889_v30, 0.0 }
  0xcc   : > { %v764_v5 = vmul.f32 0.0625, %v597_v50  ;;  %v600_v36 = vpop.xlane.xlu1 %599  ;;  %v890_v25 = vmul.f32 %v2969_v2, %v2969_v2 }
  0xcd   : > { %v765_v10 = vmul.f32 0.0625, %v600_v36  ;;  %v891_v46 = vmul.f32 %v2973_v19, %v2973_v19 }
  0xce   : > { %v2981_v17 = vsub.f32 %v2490_v60, %v764_v5  ;;  %v974_v49 = vsel %vm558_vm0, %v890_v25, 0.0 }
  0xcf   : > { %v2985_v54 = vsub.f32 %v2498_v3, %v765_v10  ;;  %972 = vadd.xlane.f32.xlu1 %v971_v38  ;;  %975 = vadd.xlane.f32.xlu0 %v974_v49  ;;  %v603_v34 = vpop.xlane.xlu0 %602  ;;  %v977_v58 = vsel %vm558_vm0, %v891_v46, 0.0 }
  0xd0   : > { %v766_v24 = vmul.f32 0.0625, %v603_v34  ;;  %v606_v21 = vpop.xlane.xlu1 %605  ;;  %v892_v61 = vmul.f32 %v2981_v17, %v2981_v17 }
  0xd1   : > { %v767_v30 = vmul.f32 0.0625, %v606_v21  ;;  %v893_v60 = vmul.f32 %v2985_v54, %v2985_v54 }
  0xd2   : > { %v2993_v33 = vsub.f32 %v2508_v15, %v766_v24  ;;  %v980_v3 = vsel %vm558_vm0, %v892_v61, 0.0 }
  0xd3   : > { %v2997_v50 = vsub.f32 %v2516_v22, %v767_v30  ;;  %978 = vadd.xlane.f32.xlu1 %v977_v58  ;;  %981 = vadd.xlane.f32.xlu0 %v980_v3  ;;  %v609_v5 = vpop.xlane.xlu0 %608  ;;  %v983_v25 = vsel %vm558_vm0, %v893_v60, 0.0 }
  0xd4   : > { %v768_v36 = vmul.f32 0.0625, %v609_v5  ;;  %v612_v38 = vpop.xlane.xlu1 %611  ;;  %v894_v10 = vmul.f32 %v2993_v33, %v2993_v33 }
  0xd5   : > { %v769_v46 = vmul.f32 0.0625, %v612_v38  ;;  %v895_v15 = vmul.f32 %v2997_v50, %v2997_v50 }
  0xd6   : > { %v3005_v49 = vsub.f32 %v2522_v29, %v768_v36  ;;  %v986_v22 = vsel %vm558_vm0, %v894_v10, 0.0 }
  0xd7   : > { %v3009_v34 = vsub.f32 %v2534_v11, %v769_v46  ;;  %984 = vadd.xlane.f32.xlu1 %v983_v25  ;;  %987 = vadd.xlane.f32.xlu0 %v986_v22  ;;  %v615_v24 = vpop.xlane.xlu0 %614  ;;  %v989_v61 = vsel %vm558_vm0, %v895_v15, 0.0 }
  0xd8   : > { %v770_v21 = vmul.f32 0.0625, %v615_v24  ;;  %v618_v58 = vpop.xlane.xlu1 %617  ;;  %v896_v30 = vmul.f32 %v3005_v49, %v3005_v49 }
  0xd9   : > { %v771_v60 = vmul.f32 0.0625, %v618_v58  ;;  %v897_v29 = vmul.f32 %v3009_v34, %v3009_v34 }
  0xda   : > { %v3017_v3 = vsub.f32 %v2544_v53, %v770_v21  ;;  %v992_v11 = vsel %vm558_vm0, %v896_v30, 0.0 }
  0xdb   : > { %v3021_v5 = vsub.f32 %v2552_v59, %v771_v60  ;;  %990 = vadd.xlane.f32.xlu1 %v989_v61  ;;  %993 = vadd.xlane.f32.xlu0 %v992_v11  ;;  %v621_v36 = vpop.xlane.xlu0 %620  ;;  %v995_v10 = vsel %vm558_vm0, %v897_v29, 0.0 }
  0xdc   : > { %v772_v38 = vmul.f32 0.0625, %v621_v36  ;;  %v624_v25 = vpop.xlane.xlu1 %623  ;;  %v898_v46 = vmul.f32 %v3017_v3, %v3017_v3 }
  0xdd   : > { %v773_v15 = vmul.f32 0.0625, %v624_v25  ;;  %v899_v53 = vmul.f32 %v3021_v5, %v3021_v5 }
  0xde   : > { %v3029_v22 = vsub.f32 %v2562_v8, %v772_v38  ;;  %v998_v59 = vsel %vm558_vm0, %v898_v46, 0.0 }
  0xdf   : > { %v3033_v24 = vsub.f32 %v2570_v43, %v773_v15  ;;  %996 = vadd.xlane.f32.xlu1 %v995_v10  ;;  %999 = vadd.xlane.f32.xlu0 %v998_v59  ;;  %v627_v21 = vpop.xlane.xlu0 %626  ;;  %v1001_v30 = vsel %vm558_vm0, %v899_v53, 0.0 }
  0xe0   : > { %v774_v58 = vmul.f32 0.0625, %v627_v21  ;;  %v630_v61 = vpop.xlane.xlu1 %629  ;;  %v900_v60 = vmul.f32 %v3029_v22, %v3029_v22 }
  0xe1   : > { %v775_v29 = vmul.f32 0.0625, %v630_v61  ;;  %v901_v8 = vmul.f32 %v3033_v24, %v3033_v24 }
  0xe2   : > { %v3041_v11 = vsub.f32 %v2576_v26, %v774_v58  ;;  %v1004_v43 = vsel %vm558_vm0, %v900_v60, 0.0 }
  0xe3   : > { %v3045_v36 = vsub.f32 %v2588_v40, %v775_v29  ;;  %1002 = vadd.xlane.f32.xlu1 %v1001_v30  ;;  %1005 = vadd.xlane.f32.xlu0 %v1004_v43  ;;  %v633_v38 = vpop.xlane.xlu0 %632  ;;  %v1007_v46 = vsel %vm558_vm0, %v901_v8, 0.0 }
  0xe4   : > { %v776_v25 = vmul.f32 0.0625, %v633_v38  ;;  %v636_v10 = vpop.xlane.xlu1 %635  ;;  %v902_v15 = vmul.f32 %v3041_v11, %v3041_v11 }
  0xe5   : > { %v777_v53 = vmul.f32 0.0625, %v636_v10  ;;  %v903_v26 = vmul.f32 %v3045_v36, %v3045_v36 }
  0xe6   : > { %v3053_v59 = vsub.f32 %v2601_v13, %v776_v25  ;;  %v1010_v40 = vsel %vm558_vm0, %v902_v15, 0.0 }
  0xe7   : > { %v3057_v21 = vsub.f32 %v2609_v14, %v777_v53  ;;  %1008 = vadd.xlane.f32.xlu1 %v1007_v46  ;;  %1011 = vadd.xlane.f32.xlu0 %v1010_v40  ;;  %v639_v58 = vpop.xlane.xlu0 %638  ;;  %v1013_v60 = vsel %vm558_vm0, %v903_v26, 0.0 }
  0xe8   : > { %v778_v61 = vmul.f32 0.0625, %v639_v58  ;;  %v642_v30 = vpop.xlane.xlu1 %641  ;;  %v904_v29 = vmul.f32 %v3053_v59, %v3053_v59 }
  0xe9   : > { %v779_v8 = vmul.f32 0.0625, %v642_v30  ;;  %v905_v13 = vmul.f32 %v3057_v21, %v3057_v21 }
  0xea   : > { %v3065_v43 = vsub.f32 %v2617_v18, %v778_v61  ;;  %v1016_v14 = vsel %vm558_vm0, %v904_v29, 0.0 }
  0xeb   : > { %v3069_v38 = vsub.f32 %v2624_v32, %v779_v8  ;;  %1014 = vadd.xlane.f32.xlu1 %v1013_v60  ;;  %1017 = vadd.xlane.f32.xlu0 %v1016_v14  ;;  %v645_v25 = vpop.xlane.xlu0 %644  ;;  %v1019_v15 = vsel %vm558_vm0, %v905_v13, 0.0 }
  0xec   : > { %v780_v10 = vmul.f32 0.0625, %v645_v25  ;;  %v648_v46 = vpop.xlane.xlu1 %647  ;;  %v906_v53 = vmul.f32 %v3065_v43, %v3065_v43 }
  0xed   : > { %v781_v26 = vmul.f32 0.0625, %v648_v46  ;;  %v907_v18 = vmul.f32 %v3069_v38, %v3069_v38 }
  0xee   : > { %v3077_v40 = vsub.f32 %v2637_v47, %v780_v10  ;;  %v1022_v32 = vsel %vm558_vm0, %v906_v53, 0.0 }
  0xef   : > { %v3081_v58 = vsub.f32 %v2645_v57, %v781_v26  ;;  %1020 = vadd.xlane.f32.xlu1 %v1019_v15  ;;  %1023 = vadd.xlane.f32.xlu0 %v1022_v32  ;;  %v651_v61 = vpop.xlane.xlu0 %650  ;;  %v1025_v29 = vsel %vm558_vm0, %v907_v18, 0.0  ;;  %v3700_v32 = vld [vmem:[#allocation2_spill] sm:$0xff] }
  0xf0   : > { %v782_v30 = vmul.f32 0.0625, %v651_v61  ;;  %v654_v60 = vpop.xlane.xlu1 %653  ;;  %v908_v8 = vmul.f32 %v3077_v40, %v3077_v40 }
  0xf1   : > { %v783_v13 = vmul.f32 0.0625, %v654_v60  ;;  %v909_v47 = vmul.f32 %v3081_v58, %v3081_v58 }
  0xf2   : > { %v3089_v14 = vsub.f32 %v2656_v12, %v782_v30  ;;  %v1028_v57 = vsel %vm558_vm0, %v908_v8, 0.0  ;;  %v3702_v30 = vld [vmem:[#allocation3_spill] sm:$0xff] }
  0xf3   : > { %v3093_v25 = vsub.f32 %v2660_v23, %v783_v13  ;;  %1026 = vadd.xlane.f32.xlu1 %v1025_v29  ;;  %1029 = vadd.xlane.f32.xlu0 %v1028_v57  ;;  %v657_v10 = vpop.xlane.xlu0 %656  ;;  %v1031_v53 = vsel %vm558_vm0, %v909_v47, 0.0 }
  0xf4   : > { %v784_v46 = vmul.f32 0.0625, %v657_v10  ;;  %v660_v15 = vpop.xlane.xlu1 %659  ;;  %v910_v26 = vmul.f32 %v3089_v14, %v3089_v14 }
  0xf5   : > { %v785_v18 = vmul.f32 0.0625, %v660_v15  ;;  %v911_v12 = vmul.f32 %v3093_v25, %v3093_v25  ;;  %v3704_v15 = vld [vmem:[#allocation4_spill] sm:$0xff] }
  0xf6   : > { %v3101_v61 = vsub.f32 %v3700_v32, %v784_v46  ;;  %v1034_v23 = vsel %vm558_vm0, %v910_v26, 0.0 }
  0xf7   : > { %v3105_v60 = vsub.f32 %v3702_v30, %v785_v18  ;;  %1032 = vadd.xlane.f32.xlu1 %v1031_v53  ;;  %1035 = vadd.xlane.f32.xlu0 %v1034_v23  ;;  %v663_v29 = vpop.xlane.xlu0 %662  ;;  %v1037_v47 = vsel %vm558_vm0, %v911_v12, 0.0  ;;  %v3706_v18 = vld [vmem:[#allocation5_spill] sm:$0xff] }
  0xf8   : > { %3701 = vst [vmem:[#allocation2_spill] sm:$0xff] %v3101_v61  ;;  %v786_v8 = vmul.f32 0.0625, %v663_v29  ;;  %v666_v13 = vpop.xlane.xlu1 %665  ;;  %v912_v57 = vmul.f32 %v3101_v61, %v3101_v61 }
  0xf9   : > { %3703 = vst [vmem:[#allocation3_spill] sm:$0xff] %v3105_v60  ;;  %v787_v10 = vmul.f32 0.0625, %v666_v13  ;;  %v913_v46 = vmul.f32 %v3105_v60, %v3105_v60 }
  0xfa   : > { %v3113_v32 = vsub.f32 %v3704_v15, %v786_v8  ;;  %v1040_v26 = vsel %vm558_vm0, %v912_v57, 0.0  ;;  %v3708_v15 = vld [vmem:[#allocation6_spill] sm:$0xff] }
  0xfb   : > { %v3117_v53 = vsub.f32 %v3706_v18, %v787_v10  ;;  %1038 = vadd.xlane.f32.xlu1 %v1037_v47  ;;  %1041 = vadd.xlane.f32.xlu0 %v1040_v26  ;;  %v669_v23 = vpop.xlane.xlu0 %668  ;;  %v1043_v29 = vsel %vm558_vm0, %v913_v46, 0.0  ;;  %v3710_v10 = vld [vmem:[#allocation7_spill] sm:$0xff] }
  0xfc   : > { %3705 = vst [vmem:[#allocation4_spill] sm:$0xff] %v3113_v32  ;;  %v788_v30 = vmul.f32 0.0625, %v669_v23  ;;  %v672_v12 = vpop.xlane.xlu1 %671  ;;  %v914_v13 = vmul.f32 %v3113_v32, %v3113_v32 }
  0xfd   : > { %3707 = vst [vmem:[#allocation5_spill] sm:$0xff] %v3117_v53  ;;  %v789_v61 = vmul.f32 0.0625, %v672_v12  ;;  %v915_v8 = vmul.f32 %v3117_v53, %v3117_v53 }
  0xfe   : > { %v3125_v60 = vsub.f32 %v3708_v15, %v788_v30  ;;  %v1046_v57 = vsel %vm558_vm0, %v914_v13, 0.0  ;;  %v3712_v15 = vld [vmem:[#allocation8_spill] sm:$0xff]  ;;  %v3714_v13 = vld [vmem:[#allocation9_spill] sm:$0xff] }
  0xff   : > { %v3129_v47 = vsub.f32 %v3710_v10, %v789_v61  ;;  %1044 = vadd.xlane.f32.xlu1 %v1043_v29  ;;  %1047 = vadd.xlane.f32.xlu0 %v1046_v57  ;;  %v675_v26 = vpop.xlane.xlu0 %674  ;;  %v1049_v23 = vsel %vm558_vm0, %v915_v8, 0.0 }
 0x100   : > { %3709 = vst [vmem:[#allocation6_spill] sm:$0xff] %v3125_v60  ;;  %v790_v18 = vmul.f32 0.0625, %v675_v26  ;;  %v678_v46 = vpop.xlane.xlu1 %677  ;;  %v916_v12 = vmul.f32 %v3125_v60, %v3125_v60 }
 0x101   : > { %3711 = vst [vmem:[#allocation7_spill] sm:$0xff] %v3129_v47  ;;  %v791_v32 = vmul.f32 0.0625, %v678_v46  ;;  %v917_v30 = vmul.f32 %v3129_v47, %v3129_v47 }
 0x102   : > { %v3137_v53 = vsub.f32 %v3712_v15, %v790_v18  ;;  %v1052_v61 = vsel %vm558_vm0, %v916_v12, 0.0  ;;  %v3716_v15 = vld [vmem:[#allocation10_spill] sm:$0xff]  ;;  %v3718_v12 = vld [vmem:[#allocation11_spill] sm:$0xff] }
 0x103   : > { %v3141_v29 = vsub.f32 %v3714_v13, %v791_v32  ;;  %1050 = vadd.xlane.f32.xlu1 %v1049_v23  ;;  %1053 = vadd.xlane.f32.xlu0 %v1052_v61  ;;  %v681_v57 = vpop.xlane.xlu0 %680  ;;  %v1055_v26 = vsel %vm558_vm0, %v917_v30, 0.0 }
 0x104   : > { %3713 = vst [vmem:[#allocation8_spill] sm:$0xff] %v3137_v53  ;;  %v792_v10 = vmul.f32 0.0625, %v681_v57  ;;  %v684_v8 = vpop.xlane.xlu1 %683  ;;  %v918_v46 = vmul.f32 %v3137_v53, %v3137_v53 }
 0x105   : > { %3715 = vst [vmem:[#allocation9_spill] sm:$0xff] %v3141_v29  ;;  %v793_v60 = vmul.f32 0.0625, %v684_v8  ;;  %v919_v18 = vmul.f32 %v3141_v29, %v3141_v29 }
 0x106   : > { %v3149_v47 = vsub.f32 %v3716_v15, %v792_v10  ;;  %v1058_v32 = vsel %vm558_vm0, %v918_v46, 0.0  ;;  %v3720_v15 = vld [vmem:[#allocation12_spill] sm:$0xff]  ;;  %v3722_v46 = vld [vmem:[#allocation13_spill] sm:$0xff] }
 0x107   : > { %v3153_v23 = vsub.f32 %v3718_v12, %v793_v60  ;;  %1056 = vadd.xlane.f32.xlu1 %v1055_v26  ;;  %1059 = vadd.xlane.f32.xlu0 %v1058_v32  ;;  %v687_v61 = vpop.xlane.xlu0 %686  ;;  %v1061_v57 = vsel %vm558_vm0, %v919_v18, 0.0 }
 0x108   : > { %3717 = vst [vmem:[#allocation10_spill] sm:$0xff] %v3149_v47  ;;  %v794_v13 = vmul.f32 0.0625, %v687_v61  ;;  %v690_v30 = vpop.xlane.xlu1 %689  ;;  %v920_v8 = vmul.f32 %v3149_v47, %v3149_v47 }
 0x109   : > { %3719 = vst [vmem:[#allocation11_spill] sm:$0xff] %v3153_v23  ;;  %v795_v53 = vmul.f32 0.0625, %v690_v30  ;;  %v921_v10 = vmul.f32 %v3153_v23, %v3153_v23 }
 0x10a   : > { %v3161_v29 = vsub.f32 %v3720_v15, %v794_v13  ;;  %v1064_v60 = vsel %vm558_vm0, %v920_v8, 0.0  ;;  %v3724_v15 = vld [vmem:[#allocation14_spill] sm:$0xff]  ;;  %v3726_v8 = vld [vmem:[#allocation15_spill] sm:$0xff] }
 0x10b   : > { %v3165_v26 = vsub.f32 %v3722_v46, %v795_v53  ;;  %1062 = vadd.xlane.f32.xlu1 %v1061_v57  ;;  %1065 = vadd.xlane.f32.xlu0 %v1064_v60  ;;  %v693_v32 = vpop.xlane.xlu0 %692  ;;  %v1067_v61 = vsel %vm558_vm0, %v921_v10, 0.0 }
 0x10c   : > { %3721 = vst [vmem:[#allocation12_spill] sm:$0xff] %v3161_v29  ;;  %v796_v12 = vmul.f32 0.0625, %v693_v32  ;;  %v696_v18 = vpop.xlane.xlu1 %695  ;;  %v922_v30 = vmul.f32 %v3161_v29, %v3161_v29 }
 0x10d   : > { %3723 = vst [vmem:[#allocation13_spill] sm:$0xff] %v3165_v26  ;;  %v797_v47 = vmul.f32 0.0625, %v696_v18  ;;  %v923_v13 = vmul.f32 %v3165_v26, %v3165_v26 }
 0x10e   : > { %v3173_v23 = vsub.f32 %v3724_v15, %v796_v12  ;;  %v1070_v53 = vsel %vm558_vm0, %v922_v30, 0.0  ;;  %v3727_v15 = vld [vmem:[#allocation16_spill] sm:$0xff]  ;;  %v3728_v30 = vld [vmem:[#allocation17_spill] sm:$0xff] }
 0x10f   : > { %v3177_v57 = vsub.f32 %v3726_v8, %v797_v47  ;;  %1068 = vadd.xlane.f32.xlu1 %v1067_v61  ;;  %1071 = vadd.xlane.f32.xlu0 %v1070_v53  ;;  %v699_v60 = vpop.xlane.xlu0 %698  ;;  %v1073_v32 = vsel %vm558_vm0, %v923_v13, 0.0 }
 0x110   : > { %3725 = vst [vmem:[#allocation14_spill] sm:$0xff] %v3173_v23  ;;  %v798_v46 = vmul.f32 0.0625, %v699_v60  ;;  %v702_v10 = vpop.xlane.xlu1 %701  ;;  %v924_v18 = vmul.f32 %v3173_v23, %v3173_v23 }
 0x111   : > { %v799_v29 = vmul.f32 0.0625, %v702_v10  ;;  %v925_v12 = vmul.f32 %v3177_v57, %v3177_v57 }
 0x112   : > { %v3185_v26 = vsub.f32 %v3727_v15, %v798_v46  ;;  %v1076_v47 = vsel %vm558_vm0, %v924_v18, 0.0 }
 0x113   : > { %v3189_v61 = vsub.f32 %v3728_v30, %v799_v29  ;;  %1074 = vadd.xlane.f32.xlu1 %v1073_v32  ;;  %1077 = vadd.xlane.f32.xlu0 %v1076_v47  ;;  %v705_v53 = vpop.xlane.xlu0 %704  ;;  %v1079_v60 = vsel %vm558_vm0, %v925_v12, 0.0 }
 0x114   : > { %v800_v8 = vmul.f32 0.0625, %v705_v53  ;;  %v708_v13 = vpop.xlane.xlu1 %707  ;;  %v926_v10 = vmul.f32 %v3185_v26, %v3185_v26 }
 0x115   : > { %3729 = vst [vmem:[#allocation15_spill] sm:$0xff] %v3189_v61  ;;  %v801_v23 = vmul.f32 0.0625, %v708_v13  ;;  %v927_v46 = vmul.f32 %v3189_v61, %v3189_v61 }
 0x116   : > { %v3197_v15 = vsub.f32 %v2817_v0, %v800_v8  ;;  %v1082_v29 = vsel %vm558_vm0, %v926_v10, 0.0  ;;  %v3730_v8 = vld [vmem:[#allocation18_spill] sm:$0xff] }
 0x117   : > { %v3201_v32 = vsub.f32 %v2825_v37, %v801_v23  ;;  %1080 = vadd.xlane.f32.xlu1 %v1079_v60  ;;  %1083 = vadd.xlane.f32.xlu0 %v1082_v29  ;;  %v711_v18 = vpop.xlane.xlu0 %710  ;;  %v1085_v30 = vsel %vm558_vm0, %v927_v46, 0.0 }
 0x118   : > { %v802_v47 = vmul.f32 0.0625, %v711_v18  ;;  %v714_v12 = vpop.xlane.xlu1 %713  ;;  %v928_v53 = vmul.f32 %v3197_v15, %v3197_v15 }
 0x119   : > { %v803_v13 = vmul.f32 0.0625, %v714_v12  ;;  %v929_v0 = vmul.f32 %v3201_v32, %v3201_v32 }
 0x11a   : > { %v3209_v61 = vsub.f32 %v3730_v8, %v802_v47  ;;  %v1088_v37 = vsel %vm558_vm0, %v928_v53, 0.0 }
 0x11b   : > { %v3213_v23 = vsub.f32 %v2840_v7, %v803_v13  ;;  %1086 = vadd.xlane.f32.xlu1 %v1085_v30  ;;  %1089 = vadd.xlane.f32.xlu0 %v1088_v37  ;;  %v717_v60 = vpop.xlane.xlu0 %716  ;;  %v1091_v29 = vsel %vm558_vm0, %v929_v0, 0.0 }
 0x11c   : > { %v804_v10 = vmul.f32 0.0625, %v717_v60  ;;  %v720_v46 = vpop.xlane.xlu1 %719  ;;  %v930_v18 = vmul.f32 %v3209_v61, %v3209_v61 }
 0x11d   : > { %v805_v12 = vmul.f32 0.0625, %v720_v46  ;;  %v931_v47 = vmul.f32 %v3213_v23, %v3213_v23 }
 0x11e   : > { %v3221_v8 = vsub.f32 %v2850_v27, %v804_v10  ;;  %v1094_v7 = vsel %vm558_vm0, %v930_v18, 0.0 }
 0x11f   : > { %v3225_v30 = vsub.f32 %v2855_v6, %v805_v12  ;;  %1092 = vadd.xlane.f32.xlu1 %v1091_v29  ;;  %1095 = vadd.xlane.f32.xlu0 %v1094_v7  ;;  %v723_v53 = vpop.xlane.xlu0 %722  ;;  %v1097_v37 = vsel %vm558_vm0, %v931_v47, 0.0 }
 0x120   : > { %v806_v13 = vmul.f32 0.0625, %v723_v53  ;;  %v726_v0 = vpop.xlane.xlu1 %725  ;;  %v932_v60 = vmul.f32 %v3221_v8, %v3221_v8 }
 0x121   : > { %v807_v46 = vmul.f32 0.0625, %v726_v0  ;;  %v933_v27 = vmul.f32 %v3225_v30, %v3225_v30 }
 0x122   : > { %v3233_v10 = vsub.f32 %v2861_v55, %v806_v13  ;;  %v1100_v6 = vsel %vm558_vm0, %v932_v60, 0.0 }
 0x123   : > { %v3237_v29 = vsub.f32 %v2865_v39, %v807_v46  ;;  %1098 = vadd.xlane.f32.xlu1 %v1097_v37  ;;  %1101 = vadd.xlane.f32.xlu0 %v1100_v6  ;;  %v729_v18 = vpop.xlane.xlu0 %728  ;;  %v1103_v7 = vsel %vm558_vm0, %v933_v27, 0.0 }
 0x124   : > { %v808_v12 = vmul.f32 0.0625, %v729_v18  ;;  %v732_v47 = vpop.xlane.xlu1 %731  ;;  %v934_v53 = vmul.f32 %v3233_v10, %v3233_v10 }
 0x125   : > { %v809_v0 = vmul.f32 0.0625, %v732_v47  ;;  %v935_v55 = vmul.f32 %v3237_v29, %v3237_v29 }
 0x126   : > { %v3245_v13 = vsub.f32 %v2870_v31, %v808_v12  ;;  %v1106_v39 = vsel %vm558_vm0, %v934_v53, 0.0 }
 0x127   : > { %v3249_v37 = vsub.f32 %v2875_v4, %v809_v0  ;;  %1104 = vadd.xlane.f32.xlu1 %v1103_v7  ;;  %1107 = vadd.xlane.f32.xlu0 %v1106_v39  ;;  %v735_v60 = vpop.xlane.xlu0 %734  ;;  %v1109_v6 = vsel %vm558_vm0, %v935_v55, 0.0 }
 0x128   : > { %v810_v46 = vmul.f32 0.0625, %v735_v60  ;;  %v738_v27 = vpop.xlane.xlu1 %737  ;;  %v936_v18 = vmul.f32 %v3245_v13, %v3245_v13 }
 0x129   : > { %v811_v47 = vmul.f32 0.0625, %v738_v27  ;;  %v937_v31 = vmul.f32 %v3249_v37, %v3249_v37 }
 0x12a   : > { %v3257_v12 = vsub.f32 %v2880_v48, %v810_v46  ;;  %v1112_v4 = vsel %vm558_vm0, %v936_v18, 0.0 }
 0x12b   : > { %v3261_v7 = vsub.f32 %v2885_v62, %v811_v47  ;;  %1110 = vadd.xlane.f32.xlu1 %v1109_v6  ;;  %1113 = vadd.xlane.f32.xlu0 %v1112_v4  ;;  %v741_v53 = vpop.xlane.xlu0 %740  ;;  %v1115_v39 = vsel %vm558_vm0, %v937_v31, 0.0 }
 0x12c   : > { %v812_v0 = vmul.f32 0.0625, %v741_v53  ;;  %v744_v55 = vpop.xlane.xlu1 %743  ;;  %v938_v60 = vmul.f32 %v3257_v12, %v3257_v12 }
 0x12d   : > { %3731 = vst [vmem:[#allocation16_spill] sm:$0xff] %v3261_v7  ;;  %v813_v27 = vmul.f32 0.0625, %v744_v55  ;;  %v939_v48 = vmul.f32 %v3261_v7, %v3261_v7 }
 0x12e   : > { %v3269_v46 = vsub.f32 %v2890_v16, %v812_v0  ;;  %v1118_v62 = vsel %vm558_vm0, %v938_v60, 0.0 }
 0x12f   : > { %v3273_v6 = vsub.f32 %v2895_v1, %v813_v27  ;;  %1116 = vadd.xlane.f32.xlu1 %v1115_v39  ;;  %1119 = vadd.xlane.f32.xlu0 %v1118_v62  ;;  %v747_v18 = vpop.xlane.xlu0 %746  ;;  %v1121_v4 = vsel %vm558_vm0, %v939_v48, 0.0 }
 0x130   : > { %3732 = vst [vmem:[#allocation17_spill] sm:$0xff] %v3269_v46  ;;  %v814_v47 = vmul.f32 0.0625, %v747_v18  ;;  %v750_v31 = vpop.xlane.xlu1 %749  ;;  %v940_v53 = vmul.f32 %v3269_v46, %v3269_v46 }
 0x131   : > { %3733 = vst [vmem:[#allocation18_spill] sm:$0xff] %v3273_v6  ;;  %v815_v55 = vmul.f32 0.0625, %v750_v31  ;;  %v941_v16 = vmul.f32 %v3273_v6, %v3273_v6 }
 0x132   : > { %v3281_v0 = vsub.f32 %v2900_v20, %v814_v47  ;;  %v1124_v1 = vsel %vm558_vm0, %v940_v53, 0.0 }
 0x133   : > { %v3285_v39 = vsub.f32 %v2904_v63, %v815_v55  ;;  %1122 = vadd.xlane.f32.xlu1 %v1121_v4  ;;  %1125 = vadd.xlane.f32.xlu0 %v1124_v1  ;;  %v1127_v60 = vsel %vm558_vm0, %v941_v16, 0.0 }
 0x134   : > { %3734 = vst [vmem:[#allocation19_spill] sm:$0xff] %v3281_v0  ;;  %v942_v27 = vmul.f32 %v3281_v0, %v3281_v0 }
 0x135   : > { %3735 = vst [vmem:[#allocation20_spill] sm:$0xff] %v3285_v39  ;;  %v943_v48 = vmul.f32 %v3285_v39, %v3285_v39 }
 0x136   : > { %v1130_v62 = vsel %vm558_vm0, %v942_v27, 0.0 }
 0x137   : > { %1128 = vadd.xlane.f32.xlu1 %v1127_v60  ;;  %1131 = vadd.xlane.f32.xlu0 %v1130_v62  ;;  %v1133_v20 = vsel %vm558_vm0, %v943_v48, 0.0 }
 0x13b   : > { %1134 = vadd.xlane.f32.xlu1 %v1133_v20 }
 0x148   : > { %v946_v18 = vpop.xlane.xlu0 %945 }
 0x149   : > { %v1136_v63 = vmul.f32 0.0625, %v946_v18 }
 0x14b   : > { %v1200_v47 = vadd.f32 1e-05, %v1136_v63 }
 0x14c   : > { %v949_v31 = vpop.xlane.xlu1 %948  ;;  %v952_v4 = vpop.xlane.xlu0 %951 }
 0x14d   : > { %2188 = vrsqrt.f32 %v1200_v47  ;;  %v1137_v53 = vmul.f32 0.0625, %v949_v31  ;;  %v1138_v55 = vmul.f32 0.0625, %v952_v4  ;;  %v3297_v31 = vld [vmem:[%s3644_s1] ss:$0 sm:$0xff] }
 0x14f   : > { %v1201_v16 = vadd.f32 1e-05, %v1137_v53  ;;  %v1202_v1 = vadd.f32 1e-05, %v1138_v55  ;;  %v3303_v55 = vld [vmem:[%s3645_s2] ss:$0 sm:$0xff] }
 0x150   : > { %v955_v0 = vpop.xlane.xlu1 %954  ;;  %v958_v6 = vpop.xlane.xlu0 %957 }
 0x151   : > { %2190 = vrsqrt.f32 %v1201_v16  ;;  %v1139_v39 = vmul.f32 0.0625, %v955_v0  ;;  %v1140_v27 = vmul.f32 0.0625, %v958_v6 }
 0x152   : > { %2192 = vrsqrt.f32 %v1202_v1 }
 0x153   : > { %v1203_v60 = vadd.f32 1e-05, %v1139_v39  ;;  %v1204_v62 = vadd.f32 1e-05, %v1140_v27 }
 0x154   : > { %v961_v48 = vpop.xlane.xlu1 %960  ;;  %v964_v20 = vpop.xlane.xlu0 %963 }
 0x155   : > { %2194 = vrsqrt.f32 %v1203_v60  ;;  %v1141_v18 = vmul.f32 0.0625, %v961_v48  ;;  %v1142_v63 = vmul.f32 0.0625, %v964_v20 }
 0x156   : > { %2196 = vrsqrt.f32 %v1204_v62 }
 0x157   : > { %v2189_v47 = vpop.eup %2188  ;;  %v1205_v4 = vadd.f32 1e-05, %v1141_v18  ;;  %v1206_v53 = vadd.f32 1e-05, %v1142_v63 }
 0x158   : > { %v1328_v6 = vmul.f32 %v2189_v47, %v2911_v44  ;;  %v967_v0 = vpop.xlane.xlu1 %966  ;;  %v970_v39 = vpop.xlane.xlu0 %969 }
 0x159   : > { %2198 = vrsqrt.f32 %v1205_v4  ;;  %v1143_v16 = vmul.f32 0.0625, %v967_v0  ;;  %v1144_v1 = vmul.f32 0.0625, %v970_v39 }
 0x15a   : > { %v1399_v27 = vmul.f32 %v3297_v31, %v1328_v6  ;;  %2200 = vrsqrt.f32 %v1206_v53 }
 0x15b   : > { %v2191_v60 = vpop.eup %2190  ;;  %v1207_v62 = vadd.f32 1e-05, %v1143_v16  ;;  %v1208_v48 = vadd.f32 1e-05, %v1144_v1 }
 0x15c   : > { %v2193_v20 = vpop.eup %2192  ;;  %v1470_v44 = vadd.f32 %v3303_v55, %v1399_v27  ;;  %v1329_v18 = vmul.f32 %v2191_v60, %v2921_v35  ;;  %v973_v63 = vpop.xlane.xlu1 %972 }
 0x15d   : > { %v976_v47 = vpop.xlane.xlu0 %975  ;;  %v1330_v4 = vmul.f32 %v2193_v20, %v2914_v9  ;;  %2202 = vrsqrt.f32 %v1207_v62  ;;  %v1145_v53 = vmul.f32 0.0625, %v973_v63 }
 0x15e   : > { %v1146_v6 = vmul.f32 0.0625, %v976_v47  ;;  %v1988_v0 = vpack.c.bf16 %v1470_v44, %v1470_v44  ;;  %v1400_v39 = vmul.f32 %v3297_v31, %v1329_v18  ;;  %2204 = vrsqrt.f32 %v1208_v48 }
 0x15f   : > { %v2195_v16 = vpop.eup %2194  ;;  %v1401_v35 = vmul.f32 %v3297_v31, %v1330_v4  ;;  %v1209_v1 = vadd.f32 1e-05, %v1145_v53 }
 0x160   : > { %v1210_v27 = vadd.f32 1e-05, %v1146_v6  ;;  %v2197_v60 = vpop.eup %2196  ;;  %1791 = vst.msk [vmem:[%s3312_s26] sm:$0xf] %vm1790_vm1, %v1988_v0  ;;  %v1471_v46 = vadd.f32 %v3303_v55, %v1400_v39  ;;  %v1331_v7 = vmul.f32 %v2195_v16, %v2925_v41  ;;  %v979_v9 = vpop.xlane.xlu1 %978 }
 0x161   : > { %v982_v62 = vpop.xlane.xlu0 %981  ;;  %v1472_v20 = vadd.f32 %v3303_v55, %v1401_v35  ;;  %v1332_v44 = vmul.f32 %v2197_v60, %v2933_v51  ;;  %2206 = vrsqrt.f32 %v1209_v1  ;;  %v1147_v48 = vmul.f32 0.0625, %v979_v9 }
 0x162   : > { %v1989_v18 = vpack.c.bf16 %v1471_v46, %v1471_v46  ;;  %v1402_v63 = vmul.f32 %v3297_v31, %v1331_v7  ;;  %2208 = vrsqrt.f32 %v1210_v27  ;;  %v1148_v47 = vmul.f32 0.0625, %v982_v62 }
 0x163   : > { %v2199_v4 = vpop.eup %2198  ;;  %v1990_v53 = vpack.c.bf16 %v1472_v20, %v1472_v20  ;;  %v1403_v6 = vmul.f32 %v3297_v31, %v1332_v44  ;;  %v1211_v41 = vadd.f32 1e-05, %v1147_v48 }
 0x164   : > { %v2201_v0 = vpop.eup %2200  ;;  %1792 = vst.msk [vmem:[%s3312_s26 + $0x4] sm:$0xf] %vm1790_vm1, %v1989_v18  ;;  %v1473_v39 = vadd.f32 %v3303_v55, %v1402_v63  ;;  %v1333_v51 = vmul.f32 %v2199_v4, %v2937_v56  ;;  %v1212_v16 = vadd.f32 1e-05, %v1148_v47  ;;  %v985_v35 = vpop.xlane.xlu1 %984 }
 0x165   : > { %v988_v46 = vpop.xlane.xlu0 %987  ;;  %1793 = vst.msk [vmem:[%s3312_s26 + $0x8] sm:$0xf] %vm1790_vm1, %v1990_v53  ;;  %v1474_v7 = vadd.f32 %v3303_v55, %v1403_v6  ;;  %v1334_v1 = vmul.f32 %v2201_v0, %v2945_v42  ;;  %2210 = vrsqrt.f32 %v1211_v41  ;;  %v1149_v27 = vmul.f32 0.0625, %v985_v35 }
 0x166   : > { %v1991_v60 = vpack.c.bf16 %v1473_v39, %v1473_v39  ;;  %v1404_v9 = vmul.f32 %v3297_v31, %v1333_v51  ;;  %2212 = vrsqrt.f32 %v1212_v16  ;;  %v1150_v62 = vmul.f32 0.0625, %v988_v46 }
 0x167   : > { %v2203_v20 = vpop.eup %2202  ;;  %v1992_v56 = vpack.c.bf16 %v1474_v7, %v1474_v7  ;;  %v1405_v44 = vmul.f32 %v3297_v31, %v1334_v1  ;;  %v1213_v48 = vadd.f32 1e-05, %v1149_v27 }
 0x168   : > { %v2205_v18 = vpop.eup %2204  ;;  %1794 = vst.msk [vmem:[%s3312_s26 + $0xc] sm:$0xf] %vm1790_vm1, %v1991_v60  ;;  %v1475_v63 = vadd.f32 %v3303_v55, %v1404_v9  ;;  %v1335_v42 = vmul.f32 %v2203_v20, %v2949_v45  ;;  %v1214_v47 = vadd.f32 1e-05, %v1150_v62  ;;  %v991_v4 = vpop.xlane.xlu1 %990 }
 0x169   : > { %v994_v53 = vpop.xlane.xlu0 %993  ;;  %1795 = vst.msk [vmem:[%s3312_s26 + $0x10] sm:$0xf] %vm1790_vm1, %v1992_v56  ;;  %v1476_v6 = vadd.f32 %v3303_v55, %v1405_v44  ;;  %v1336_v41 = vmul.f32 %v2205_v18, %v2957_v28  ;;  %2214 = vrsqrt.f32 %v1213_v48  ;;  %v1151_v0 = vmul.f32 0.0625, %v991_v4 }
 0x16a   : > { %v1993_v39 = vpack.c.bf16 %v1475_v63, %v1475_v63  ;;  %v1406_v51 = vmul.f32 %v3297_v31, %v1335_v42  ;;  %2216 = vrsqrt.f32 %v1214_v47  ;;  %v1152_v16 = vmul.f32 0.0625, %v994_v53 }
 0x16b   : > { %v2207_v35 = vpop.eup %2206  ;;  %v1994_v45 = vpack.c.bf16 %v1476_v6, %v1476_v6  ;;  %v1407_v46 = vmul.f32 %v3297_v31, %v1336_v41  ;;  %v1215_v7 = vadd.f32 1e-05, %v1151_v0 }
 0x16c   : > { %v2209_v1 = vpop.eup %2208  ;;  %1796 = vst.msk [vmem:[%s3312_s26 + $0x14] sm:$0xf] %vm1790_vm1, %v1993_v39  ;;  %v1477_v27 = vadd.f32 %v3303_v55, %v1406_v51  ;;  %v1337_v28 = vmul.f32 %v2207_v35, %v2961_v52  ;;  %v1216_v60 = vadd.f32 1e-05, %v1152_v16  ;;  %v997_v9 = vpop.xlane.xlu1 %996 }
 0x16d   : > { %v1000_v62 = vpop.xlane.xlu0 %999  ;;  %1797 = vst.msk [vmem:[%s3312_s26 + $0x18] sm:$0xf] %vm1790_vm1, %v1994_v45  ;;  %v1478_v20 = vadd.f32 %v3303_v55, %v1407_v46  ;;  %v1338_v56 = vmul.f32 %v2209_v1, %v2969_v2  ;;  %2218 = vrsqrt.f32 %v1215_v7  ;;  %v1153_v44 = vmul.f32 0.0625, %v997_v9 }
 0x16e   : > { %v1995_v48 = vpack.c.bf16 %v1477_v27, %v1477_v27  ;;  %v1408_v18 = vmul.f32 %v3297_v31, %v1337_v28  ;;  %2220 = vrsqrt.f32 %v1216_v60  ;;  %v1154_v63 = vmul.f32 0.0625, %v1000_v62 }
 0x16f   : > { %v2211_v42 = vpop.eup %2210  ;;  %v1996_v52 = vpack.c.bf16 %v1478_v20, %v1478_v20  ;;  %v1409_v47 = vmul.f32 %v3297_v31, %v1338_v56  ;;  %v1217_v4 = vadd.f32 1e-05, %v1153_v44 }
 0x170   : > { %v2213_v53 = vpop.eup %2212  ;;  %1798 = vst.msk [vmem:[%s3312_s26 + $0x1c] sm:$0xf] %vm1790_vm1, %v1995_v48  ;;  %v1479_v6 = vadd.f32 %v3303_v55, %v1408_v18  ;;  %v1339_v2 = vmul.f32 %v2211_v42, %v2973_v19  ;;  %v1218_v41 = vadd.f32 1e-05, %v1154_v63  ;;  %v1003_v0 = vpop.xlane.xlu1 %1002 }
 0x171   : > { %v1006_v39 = vpop.xlane.xlu0 %1005  ;;  %1799 = vst.msk [vmem:[%s3312_s26 + $0x20] sm:$0xf] %vm1790_vm1, %v1996_v52  ;;  %v1480_v51 = vadd.f32 %v3303_v55, %v1409_v47  ;;  %v1340_v16 = vmul.f32 %v2213_v53, %v2981_v17  ;;  %2222 = vrsqrt.f32 %v1217_v4  ;;  %v1155_v35 = vmul.f32 0.0625, %v1003_v0 }
 0x172   : > { %v1997_v45 = vpack.c.bf16 %v1479_v6, %v1479_v6  ;;  %v1410_v46 = vmul.f32 %v3297_v31, %v1339_v2  ;;  %2224 = vrsqrt.f32 %v1218_v41  ;;  %v1156_v7 = vmul.f32 0.0625, %v1006_v39 }
 0x173   : > { %v2215_v1 = vpop.eup %2214  ;;  %v1998_v19 = vpack.c.bf16 %v1480_v51, %v1480_v51  ;;  %v1411_v27 = vmul.f32 %v3297_v31, %v1340_v16  ;;  %v1219_v28 = vadd.f32 1e-05, %v1155_v35 }
 0x174   : > { %v2217_v60 = vpop.eup %2216  ;;  %1800 = vst.msk [vmem:[%s3312_s26 + $0x24] sm:$0xf] %vm1790_vm1, %v1997_v45  ;;  %v1481_v9 = vadd.f32 %v3303_v55, %v1410_v46  ;;  %v1341_v17 = vmul.f32 %v2215_v1, %v2985_v54  ;;  %v1220_v62 = vadd.f32 1e-05, %v1156_v7  ;;  %v1009_v20 = vpop.xlane.xlu1 %1008 }
 0x175   : > { %v1012_v56 = vpop.xlane.xlu0 %1011  ;;  %1801 = vst.msk [vmem:[%s3312_s26 + $0x28] sm:$0xf] %vm1790_vm1, %v1998_v19  ;;  %v1482_v44 = vadd.f32 %v3303_v55, %v1411_v27  ;;  %v1342_v48 = vmul.f32 %v2217_v60, %v2993_v33  ;;  %2226 = vrsqrt.f32 %v1219_v28  ;;  %v1157_v18 = vmul.f32 0.0625, %v1009_v20 }
 0x176   : > { %v1999_v63 = vpack.c.bf16 %v1481_v9, %v1481_v9  ;;  %v1412_v42 = vmul.f32 %v3297_v31, %v1341_v17  ;;  %2228 = vrsqrt.f32 %v1220_v62  ;;  %v1158_v52 = vmul.f32 0.0625, %v1012_v56 }
 0x177   : > { %v2219_v47 = vpop.eup %2218  ;;  %v2000_v54 = vpack.c.bf16 %v1482_v44, %v1482_v44  ;;  %v1413_v4 = vmul.f32 %v3297_v31, %v1342_v48  ;;  %v1221_v53 = vadd.f32 1e-05, %v1157_v18 }
 0x178   : > { %v2221_v6 = vpop.eup %2220  ;;  %1802 = vst.msk [vmem:[%s3312_s26 + $0x2c] sm:$0xf] %vm1790_vm1, %v1999_v63  ;;  %v1483_v2 = vadd.f32 %v3303_v55, %v1412_v42  ;;  %v1343_v33 = vmul.f32 %v2219_v47, %v2997_v50  ;;  %v1222_v41 = vadd.f32 1e-05, %v1158_v52  ;;  %v1015_v0 = vpop.xlane.xlu1 %1014 }
 0x179   : > { %v1018_v39 = vpop.xlane.xlu0 %1017  ;;  %1803 = vst.msk [vmem:[%s3312_s26 + $0x30] sm:$0xf] %vm1790_vm1, %v2000_v54  ;;  %v1484_v51 = vadd.f32 %v3303_v55, %v1413_v4  ;;  %v1344_v16 = vmul.f32 %v2221_v6, %v3005_v49  ;;  %2230 = vrsqrt.f32 %v1221_v53  ;;  %v1159_v35 = vmul.f32 0.0625, %v1015_v0 }
 0x17a   : > { %v2001_v45 = vpack.c.bf16 %v1483_v2, %v1483_v2  ;;  %v1414_v46 = vmul.f32 %v3297_v31, %v1343_v33  ;;  %2232 = vrsqrt.f32 %v1222_v41  ;;  %v1160_v7 = vmul.f32 0.0625, %v1018_v39 }
 0x17b   : > { %v2223_v1 = vpop.eup %2222  ;;  %v2002_v50 = vpack.c.bf16 %v1484_v51, %v1484_v51  ;;  %v1415_v19 = vmul.f32 %v3297_v31, %v1344_v16  ;;  %v1223_v27 = vadd.f32 1e-05, %v1159_v35 }
 0x17c   : > { %v2225_v28 = vpop.eup %2224  ;;  %1804 = vst.msk [vmem:[%s3312_s26 + $0x34] sm:$0xf] %vm1790_vm1, %v2001_v45  ;;  %v1485_v60 = vadd.f32 %v3303_v55, %v1414_v46  ;;  %v1345_v49 = vmul.f32 %v2223_v1, %v3009_v34  ;;  %v1224_v9 = vadd.f32 1e-05, %v1160_v7  ;;  %v1021_v17 = vpop.xlane.xlu1 %1020 }
 0x17d   : > { %v1024_v62 = vpop.xlane.xlu0 %1023  ;;  %1805 = vst.msk [vmem:[%s3312_s26 + $0x38] sm:$0xf] %vm1790_vm1, %v2002_v50  ;;  %v1486_v20 = vadd.f32 %v3303_v55, %v1415_v19  ;;  %v1346_v56 = vmul.f32 %v2225_v28, %v3017_v3  ;;  %2234 = vrsqrt.f32 %v1223_v27  ;;  %v1161_v44 = vmul.f32 0.0625, %v1021_v17 }
 0x17e   : > { %v2003_v48 = vpack.c.bf16 %v1485_v60, %v1485_v60  ;;  %v1416_v18 = vmul.f32 %v3297_v31, %v1345_v49  ;;  %2236 = vrsqrt.f32 %v1224_v9  ;;  %v1162_v63 = vmul.f32 0.0625, %v1024_v62 }
 0x17f   : > { %v2227_v42 = vpop.eup %2226  ;;  %v2004_v34 = vpack.c.bf16 %v1486_v20, %v1486_v20  ;;  %v1417_v52 = vmul.f32 %v3297_v31, %v1346_v56  ;;  %v1225_v47 = vadd.f32 1e-05, %v1161_v44 }
 0x180   : > { %v2229_v54 = vpop.eup %2228  ;;  %1806 = vst.msk [vmem:[%s3312_s26 + $0x3c] sm:$0xf] %vm1790_vm1, %v2003_v48  ;;  %v1487_v4 = vadd.f32 %v3303_v55, %v1416_v18  ;;  %v1347_v3 = vmul.f32 %v2227_v42, %v3021_v5  ;;  %v1226_v53 = vadd.f32 1e-05, %v1162_v63  ;;  %v1027_v6 = vpop.xlane.xlu1 %1026 }
 0x181   : > { %v1030_v2 = vpop.xlane.xlu0 %1029  ;;  %1807 = vst.msk [vmem:[%s3312_s26 + $0x40] sm:$0xf] %vm1790_vm1, %v2004_v34  ;;  %v1488_v33 = vadd.f32 %v3303_v55, %v1417_v52  ;;  %v1348_v41 = vmul.f32 %v2229_v54, %v3029_v22  ;;  %2238 = vrsqrt.f32 %v1225_v47  ;;  %v1163_v0 = vmul.f32 0.0625, %v1027_v6 }
 0x182   : > { %v2005_v39 = vpack.c.bf16 %v1487_v4, %v1487_v4  ;;  %v1418_v51 = vmul.f32 %v3297_v31, %v1347_v3  ;;  %2240 = vrsqrt.f32 %v1226_v53  ;;  %v1164_v16 = vmul.f32 0.0625, %v1030_v2 }
 0x183   : > { %v2231_v35 = vpop.eup %2230  ;;  %v2006_v5 = vpack.c.bf16 %v1488_v33, %v1488_v33  ;;  %v1419_v45 = vmul.f32 %v3297_v31, %v1348_v41  ;;  %v1227_v46 = vadd.f32 1e-05, %v1163_v0 }
 0x184   : > { %v2233_v7 = vpop.eup %2232  ;;  %1808 = vst.msk [vmem:[%s3312_s26 + $0x44] sm:$0xf] %vm1790_vm1, %v2005_v39  ;;  %v1489_v1 = vadd.f32 %v3303_v55, %v1418_v51  ;;  %v1349_v22 = vmul.f32 %v2231_v35, %v3033_v24  ;;  %v1228_v50 = vadd.f32 1e-05, %v1164_v16  ;;  %v1033_v19 = vpop.xlane.xlu1 %1032 }
 0x185   : > { %v1036_v27 = vpop.xlane.xlu0 %1035  ;;  %1809 = vst.msk [vmem:[%s3312_s26 + $0x48] sm:$0xf] %vm1790_vm1, %v2006_v5  ;;  %v1490_v28 = vadd.f32 %v3303_v55, %v1419_v45  ;;  %v1350_v60 = vmul.f32 %v2233_v7, %v3041_v11  ;;  %2242 = vrsqrt.f32 %v1227_v46  ;;  %v1165_v49 = vmul.f32 0.0625, %v1033_v19 }
 0x186   : > { %v2007_v9 = vpack.c.bf16 %v1489_v1, %v1489_v1  ;;  %v1420_v17 = vmul.f32 %v3297_v31, %v1349_v22  ;;  %2244 = vrsqrt.f32 %v1228_v50  ;;  %v1166_v62 = vmul.f32 0.0625, %v1036_v27 }
 0x187   : > { %v2235_v20 = vpop.eup %2234  ;;  %v2008_v24 = vpack.c.bf16 %v1490_v28, %v1490_v28  ;;  %v1421_v56 = vmul.f32 %v3297_v31, %v1350_v60  ;;  %v1229_v44 = vadd.f32 1e-05, %v1165_v49 }
 0x188   : > { %v2237_v48 = vpop.eup %2236  ;;  %1810 = vst.msk [vmem:[%s3312_s26 + $0x4c] sm:$0xf] %vm1790_vm1, %v2007_v9  ;;  %v1491_v18 = vadd.f32 %v3303_v55, %v1420_v17  ;;  %v1351_v11 = vmul.f32 %v2235_v20, %v3045_v36  ;;  %v1230_v63 = vadd.f32 1e-05, %v1166_v62  ;;  %v1039_v42 = vpop.xlane.xlu1 %1038 }
 0x189   : > { %v1042_v34 = vpop.xlane.xlu0 %1041  ;;  %1811 = vst.msk [vmem:[%s3312_s26 + $0x50] sm:$0xf] %vm1790_vm1, %v2008_v24  ;;  %v1492_v52 = vadd.f32 %v3303_v55, %v1421_v56  ;;  %v1352_v47 = vmul.f32 %v2237_v48, %v3053_v59  ;;  %2246 = vrsqrt.f32 %v1229_v44  ;;  %v1167_v54 = vmul.f32 0.0625, %v1039_v42 }
 0x18a   : > { %v2009_v4 = vpack.c.bf16 %v1491_v18, %v1491_v18  ;;  %v1422_v3 = vmul.f32 %v3297_v31, %v1351_v11  ;;  %2248 = vrsqrt.f32 %v1230_v63  ;;  %v1168_v53 = vmul.f32 0.0625, %v1042_v34 }
 0x18b   : > { %v2239_v6 = vpop.eup %2238  ;;  %v2010_v36 = vpack.c.bf16 %v1492_v52, %v1492_v52  ;;  %v1423_v2 = vmul.f32 %v3297_v31, %v1352_v47  ;;  %v1231_v33 = vadd.f32 1e-05, %v1167_v54 }
 0x18c   : > { %v2241_v41 = vpop.eup %2240  ;;  %1812 = vst.msk [vmem:[%s3312_s26 + $0x54] sm:$0xf] %vm1790_vm1, %v2009_v4  ;;  %v1493_v0 = vadd.f32 %v3303_v55, %v1422_v3  ;;  %v1353_v59 = vmul.f32 %v2239_v6, %v3057_v21  ;;  %v1232_v39 = vadd.f32 1e-05, %v1168_v53  ;;  %v1045_v51 = vpop.xlane.xlu1 %1044 }
 0x18d   : > { %v1048_v16 = vpop.xlane.xlu0 %1047  ;;  %1813 = vst.msk [vmem:[%s3312_s26 + $0x58] sm:$0xf] %vm1790_vm1, %v2010_v36  ;;  %v1494_v35 = vadd.f32 %v3303_v55, %v1423_v2  ;;  %v1354_v5 = vmul.f32 %v2241_v41, %v3065_v43  ;;  %2250 = vrsqrt.f32 %v1231_v33  ;;  %v1169_v45 = vmul.f32 0.0625, %v1045_v51 }
 0x18e   : > { %v2011_v46 = vpack.c.bf16 %v1493_v0, %v1493_v0  ;;  %v1424_v7 = vmul.f32 %v3297_v31, %v1353_v59  ;;  %2252 = vrsqrt.f32 %v1232_v39  ;;  %v1170_v1 = vmul.f32 0.0625, %v1048_v16 }
 0x18f   : > { %v2243_v22 = vpop.eup %2242  ;;  %v2012_v21 = vpack.c.bf16 %v1494_v35, %v1494_v35  ;;  %v1425_v50 = vmul.f32 %v3297_v31, %v1354_v5  ;;  %v1233_v19 = vadd.f32 1e-05, %v1169_v45  ;;  %v3736_v5 = vld [vmem:[#allocation2_spill] sm:$0xff] }
 0x190   : > { %v2245_v27 = vpop.eup %2244  ;;  %1814 = vst.msk [vmem:[%s3312_s26 + $0x5c] sm:$0xf] %vm1790_vm1, %v2011_v46  ;;  %v1495_v28 = vadd.f32 %v3303_v55, %v1424_v7  ;;  %v1355_v43 = vmul.f32 %v2243_v22, %v3069_v38  ;;  %v1234_v60 = vadd.f32 1e-05, %v1170_v1  ;;  %v1051_v49 = vpop.xlane.xlu1 %1050 }
 0x191   : > { %v1054_v9 = vpop.xlane.xlu0 %1053  ;;  %1815 = vst.msk [vmem:[%s3312_s26 + $0x60] sm:$0xf] %vm1790_vm1, %v2012_v21  ;;  %v1496_v17 = vadd.f32 %v3303_v55, %v1425_v50  ;;  %v1356_v62 = vmul.f32 %v2245_v27, %v3077_v40  ;;  %2254 = vrsqrt.f32 %v1233_v19  ;;  %v1171_v20 = vmul.f32 0.0625, %v1051_v49 }
 0x192   : > { %v2013_v24 = vpack.c.bf16 %v1495_v28, %v1495_v28  ;;  %v1426_v56 = vmul.f32 %v3297_v31, %v1355_v43  ;;  %2256 = vrsqrt.f32 %v1234_v60  ;;  %v1172_v44 = vmul.f32 0.0625, %v1054_v9  ;;  %v3737_v43 = vld [vmem:[#allocation3_spill] sm:$0xff] }
 0x193   : > { %v2247_v48 = vpop.eup %2246  ;;  %v2014_v38 = vpack.c.bf16 %v1496_v17, %v1496_v17  ;;  %v1427_v18 = vmul.f32 %v3297_v31, %v1356_v62  ;;  %v1235_v11 = vadd.f32 1e-05, %v1171_v20  ;;  %v3738_v20 = vld [vmem:[#allocation4_spill] sm:$0xff] }
 0x194   : > { %v2249_v63 = vpop.eup %2248  ;;  %1816 = vst.msk [vmem:[%s3312_s26 + $0x64] sm:$0xf] %vm1790_vm1, %v2013_v24  ;;  %v1497_v42 = vadd.f32 %v3303_v55, %v1426_v56  ;;  %v1357_v40 = vmul.f32 %v2247_v48, %v3081_v58  ;;  %v1236_v34 = vadd.f32 1e-05, %v1172_v44  ;;  %v1057_v52 = vpop.xlane.xlu1 %1056 }
 0x195   : > { %v1060_v47 = vpop.xlane.xlu0 %1059  ;;  %1817 = vst.msk [vmem:[%s3312_s26 + $0x68] sm:$0xf] %vm1790_vm1, %v2014_v38  ;;  %v1498_v54 = vadd.f32 %v3303_v55, %v1427_v18  ;;  %v1358_v4 = vmul.f32 %v2249_v63, %v3089_v14  ;;  %2258 = vrsqrt.f32 %v1235_v11  ;;  %v1173_v3 = vmul.f32 0.0625, %v1057_v52  ;;  %v3739_v52 = vld [vmem:[#allocation5_spill] sm:$0xff] }
 0x196   : > { %v2015_v53 = vpack.c.bf16 %v1497_v42, %v1497_v42  ;;  %v1428_v6 = vmul.f32 %v3297_v31, %v1357_v40  ;;  %2260 = vrsqrt.f32 %v1236_v34  ;;  %v1174_v36 = vmul.f32 0.0625, %v1060_v47 }
 0x197   : > { %v2251_v2 = vpop.eup %2250  ;;  %v2016_v58 = vpack.c.bf16 %v1498_v54, %v1498_v54  ;;  %v1429_v33 = vmul.f32 %v3297_v31, %v1358_v4  ;;  %v1237_v41 = vadd.f32 1e-05, %v1173_v3 }
 0x198   : > { %v2253_v0 = vpop.eup %2252  ;;  %1818 = vst.msk [vmem:[%s3312_s26 + $0x6c] sm:$0xf] %vm1790_vm1, %v2015_v53  ;;  %v1499_v59 = vadd.f32 %v3303_v55, %v1428_v6  ;;  %v1359_v14 = vmul.f32 %v2251_v2, %v3093_v25  ;;  %v1238_v39 = vadd.f32 1e-05, %v1174_v36  ;;  %v1063_v51 = vpop.xlane.xlu1 %1062  ;;  %v3740_v6 = vld [vmem:[#allocation6_spill] sm:$0xff] }
 0x199   : > { %v1066_v16 = vpop.xlane.xlu0 %1065  ;;  %1819 = vst.msk [vmem:[%s3312_s26 + $0x70] sm:$0xf] %vm1790_vm1, %v2016_v58  ;;  %v1500_v35 = vadd.f32 %v3303_v55, %v1429_v33  ;;  %v1360_v45 = vmul.f32 %v2253_v0, %v3736_v5  ;;  %2262 = vrsqrt.f32 %v1237_v41  ;;  %v1175_v46 = vmul.f32 0.0625, %v1063_v51 }
 0x19a   : > { %v2017_v7 = vpack.c.bf16 %v1499_v59, %v1499_v59  ;;  %v1430_v1 = vmul.f32 %v3297_v31, %v1359_v14  ;;  %2264 = vrsqrt.f32 %v1238_v39  ;;  %v1176_v22 = vmul.f32 0.0625, %v1066_v16 }
 0x19b   : > { %v2255_v21 = vpop.eup %2254  ;;  %v2018_v25 = vpack.c.bf16 %v1500_v35, %v1500_v35  ;;  %v1431_v50 = vmul.f32 %v3297_v31, %v1360_v45  ;;  %v1239_v19 = vadd.f32 1e-05, %v1175_v46  ;;  %v3741_v35 = vld [vmem:[#allocation7_spill] sm:$0xff] }
 0x19c   : > { %v2257_v27 = vpop.eup %2256  ;;  %1820 = vst.msk [vmem:[%s3312_s26 + $0x74] sm:$0xf] %vm1790_vm1, %v2017_v7  ;;  %v1501_v28 = vadd.f32 %v3303_v55, %v1430_v1  ;;  %v1361_v60 = vmul.f32 %v2255_v21, %v3737_v43  ;;  %v1240_v49 = vadd.f32 1e-05, %v1176_v22  ;;  %v1069_v9 = vpop.xlane.xlu1 %1068  ;;  %v3742_v22 = vld [vmem:[#allocation8_spill] sm:$0xff] }
 0x19d   : > { %v1072_v17 = vpop.xlane.xlu0 %1071  ;;  %1821 = vst.msk [vmem:[%s3312_s26 + $0x78] sm:$0xf] %vm1790_vm1, %v2018_v25  ;;  %v1502_v62 = vadd.f32 %v3303_v55, %v1431_v50  ;;  %v1362_v24 = vmul.f32 %v2257_v27, %v3738_v20  ;;  %2266 = vrsqrt.f32 %v1239_v19  ;;  %v1177_v56 = vmul.f32 0.0625, %v1069_v9 }
 0x19e   : > { %v2019_v44 = vpack.c.bf16 %v1501_v28, %v1501_v28  ;;  %v1432_v48 = vmul.f32 %v3297_v31, %v1361_v60  ;;  %2268 = vrsqrt.f32 %v1240_v49  ;;  %v1178_v38 = vmul.f32 0.0625, %v1072_v17 }
 0x19f   : > { %v2259_v18 = vpop.eup %2258  ;;  %v2020_v11 = vpack.c.bf16 %v1502_v62, %v1502_v62  ;;  %v1433_v63 = vmul.f32 %v3297_v31, %v1362_v24  ;;  %v1241_v42 = vadd.f32 1e-05, %v1177_v56  ;;  %v3743_v62 = vld [vmem:[#allocation9_spill] sm:$0xff] }
 0x1a0   : > { %v2261_v40 = vpop.eup %2260  ;;  %1822 = vst.msk [vmem:[%s3312_s26 + $0x7c] sm:$0xf] %vm1790_vm1, %v2019_v44  ;;  %v1503_v34 = vadd.f32 %v3303_v55, %v1432_v48  ;;  %v1363_v47 = vmul.f32 %v2259_v18, %v3739_v52  ;;  %v1242_v54 = vadd.f32 1e-05, %v1178_v38  ;;  %v1075_v4 = vpop.xlane.xlu1 %1074  ;;  %v3744_v38 = vld [vmem:[#allocation10_spill] sm:$0xff] }
 0x1a1   : > { %v1078_v3 = vpop.xlane.xlu0 %1077  ;;  %1823 = vst.msk [vmem:[%s3312_s26 + $0x80] sm:$0xf] %vm1790_vm1, %v2020_v11  ;;  %v1504_v53 = vadd.f32 %v3303_v55, %v1433_v63  ;;  %v1364_v36 = vmul.f32 %v2261_v40, %v3740_v6  ;;  %2270 = vrsqrt.f32 %v1241_v42  ;;  %v1179_v2 = vmul.f32 0.0625, %v1075_v4 }
 0x1a2   : > { %v2021_v58 = vpack.c.bf16 %v1503_v34, %v1503_v34  ;;  %v1434_v33 = vmul.f32 %v3297_v31, %v1363_v47  ;;  %2272 = vrsqrt.f32 %v1242_v54  ;;  %v1180_v41 = vmul.f32 0.0625, %v1078_v3 }
 0x1a3   : > { %v2263_v0 = vpop.eup %2262  ;;  %v2022_v59 = vpack.c.bf16 %v1504_v53, %v1504_v53  ;;  %v1435_v14 = vmul.f32 %v3297_v31, %v1364_v36  ;;  %v1243_v39 = vadd.f32 1e-05, %v1179_v2  ;;  %v3745_v53 = vld [vmem:[#allocation11_spill] sm:$0xff] }
 0x1a4   : > { %v2265_v51 = vpop.eup %2264  ;;  %1824 = vst.msk [vmem:[%s3312_s26 + $0x84] sm:$0xf] %vm1790_vm1, %v2021_v58  ;;  %v1505_v16 = vadd.f32 %v3303_v55, %v1434_v33  ;;  %v1365_v5 = vmul.f32 %v2263_v0, %v3741_v35  ;;  %v1244_v45 = vadd.f32 1e-05, %v1180_v41  ;;  %v1081_v46 = vpop.xlane.xlu1 %1080  ;;  %v3746_v41 = vld [vmem:[#allocation12_spill] sm:$0xff] }
 0x1a5   : > { %v1084_v7 = vpop.xlane.xlu0 %1083  ;;  %1825 = vst.msk [vmem:[%s3312_s26 + $0x88] sm:$0xf] %vm1790_vm1, %v2022_v59  ;;  %v1506_v1 = vadd.f32 %v3303_v55, %v1435_v14  ;;  %v1366_v21 = vmul.f32 %v2265_v51, %v3742_v22  ;;  %2274 = vrsqrt.f32 %v1243_v39  ;;  %v1181_v25 = vmul.f32 0.0625, %v1081_v46 }
 0x1a6   : > { %v2023_v50 = vpack.c.bf16 %v1505_v16, %v1505_v16  ;;  %v1436_v19 = vmul.f32 %v3297_v31, %v1365_v5  ;;  %2276 = vrsqrt.f32 %v1244_v45  ;;  %v1182_v27 = vmul.f32 0.0625, %v1084_v7 }
 0x1a7   : > { %v2267_v28 = vpop.eup %2266  ;;  %v2024_v43 = vpack.c.bf16 %v1506_v1, %v1506_v1  ;;  %v1437_v60 = vmul.f32 %v3297_v31, %v1366_v21  ;;  %v1245_v49 = vadd.f32 1e-05, %v1181_v25  ;;  %v3747_v1 = vld [vmem:[#allocation13_spill] sm:$0xff] }
 0x1a8   : > { %v2269_v9 = vpop.eup %2268  ;;  %1826 = vst.msk [vmem:[%s3312_s26 + $0x8c] sm:$0xf] %vm1790_vm1, %v2023_v50  ;;  %v1507_v17 = vadd.f32 %v3303_v55, %v1436_v19  ;;  %v1367_v20 = vmul.f32 %v2267_v28, %v3743_v62  ;;  %v1246_v24 = vadd.f32 1e-05, %v1182_v27  ;;  %v1087_v56 = vpop.xlane.xlu1 %1086  ;;  %v3748_v27 = vld [vmem:[#allocation14_spill] sm:$0xff] }
 0x1a9   : > { %v1090_v44 = vpop.xlane.xlu0 %1089  ;;  %1827 = vst.msk [vmem:[%s3312_s26 + $0x90] sm:$0xf] %vm1790_vm1, %v2024_v43  ;;  %v1508_v48 = vadd.f32 %v3303_v55, %v1437_v60  ;;  %v1368_v18 = vmul.f32 %v2269_v9, %v3744_v38  ;;  %2278 = vrsqrt.f32 %v1245_v49  ;;  %v1183_v11 = vmul.f32 0.0625, %v1087_v56 }
 0x1aa   : > { %v2025_v63 = vpack.c.bf16 %v1507_v17, %v1507_v17  ;;  %v1438_v42 = vmul.f32 %v3297_v31, %v1367_v20  ;;  %2280 = vrsqrt.f32 %v1246_v24  ;;  %v1184_v40 = vmul.f32 0.0625, %v1090_v44 }
 0x1ab   : > { %v2271_v34 = vpop.eup %2270  ;;  %v2026_v52 = vpack.c.bf16 %v1508_v48, %v1508_v48  ;;  %v1439_v47 = vmul.f32 %v3297_v31, %v1368_v18  ;;  %v1247_v54 = vadd.f32 1e-05, %v1183_v11 }
 0x1ac   : > { %v2273_v4 = vpop.eup %2272  ;;  %1828 = vst.msk [vmem:[%s3312_s26 + $0x94] sm:$0xf] %vm1790_vm1, %v2025_v63  ;;  %v1509_v3 = vadd.f32 %v3303_v55, %v1438_v42  ;;  %v1369_v6 = vmul.f32 %v2271_v34, %v3745_v53  ;;  %v1248_v36 = vadd.f32 1e-05, %v1184_v40  ;;  %v1093_v2 = vpop.xlane.xlu1 %1092 }
 0x1ad   : > { %v1096_v58 = vpop.xlane.xlu0 %1095  ;;  %1829 = vst.msk [vmem:[%s3312_s26 + $0x98] sm:$0xf] %vm1790_vm1, %v2026_v52  ;;  %v1510_v33 = vadd.f32 %v3303_v55, %v1439_v47  ;;  %v1370_v0 = vmul.f32 %v2273_v4, %v3746_v41  ;;  %2282 = vrsqrt.f32 %v1247_v54  ;;  %v1185_v59 = vmul.f32 0.0625, %v1093_v2 }
 0x1ae   : > { %v2027_v14 = vpack.c.bf16 %v1509_v3, %v1509_v3  ;;  %v1440_v39 = vmul.f32 %v3297_v31, %v1369_v6  ;;  %2284 = vrsqrt.f32 %v1248_v36  ;;  %v1186_v51 = vmul.f32 0.0625, %v1096_v58  ;;  %v3749_v36 = vld [vmem:[#allocation15_spill] sm:$0xff] }
 0x1af   : > { %v2275_v16 = vpop.eup %2274  ;;  %v2028_v35 = vpack.c.bf16 %v1510_v33, %v1510_v33  ;;  %v1441_v5 = vmul.f32 %v3297_v31, %v1370_v0  ;;  %v1249_v45 = vadd.f32 1e-05, %v1185_v59 }
 0x1b0   : > { %v2277_v46 = vpop.eup %2276  ;;  %1830 = vst.msk [vmem:[%s3312_s26 + $0x9c] sm:$0xf] %vm1790_vm1, %v2027_v14  ;;  %v1511_v7 = vadd.f32 %v3303_v55, %v1440_v39  ;;  %v1371_v22 = vmul.f32 %v2275_v16, %v3747_v1  ;;  %v1250_v21 = vadd.f32 1e-05, %v1186_v51  ;;  %v1099_v25 = vpop.xlane.xlu1 %1098 }
 0x1b1   : > { %v1102_v50 = vpop.xlane.xlu0 %1101  ;;  %1831 = vst.msk [vmem:[%s3312_s26 + $0xa0] sm:$0xf] %vm1790_vm1, %v2028_v35  ;;  %v1512_v19 = vadd.f32 %v3303_v55, %v1441_v5  ;;  %v1372_v28 = vmul.f32 %v2277_v46, %v3748_v27  ;;  %2286 = vrsqrt.f32 %v1249_v45  ;;  %v1187_v43 = vmul.f32 0.0625, %v1099_v25 }
 0x1b2   : > { %v2029_v60 = vpack.c.bf16 %v1511_v7, %v1511_v7  ;;  %v1442_v49 = vmul.f32 %v3297_v31, %v1371_v22  ;;  %2288 = vrsqrt.f32 %v1250_v21  ;;  %v1188_v9 = vmul.f32 0.0625, %v1102_v50 }
 0x1b3   : > { %v2279_v17 = vpop.eup %2278  ;;  %v2030_v62 = vpack.c.bf16 %v1512_v19, %v1512_v19  ;;  %v1443_v20 = vmul.f32 %v3297_v31, %v1372_v28  ;;  %v1251_v24 = vadd.f32 1e-05, %v1187_v43 }
 0x1b4   : > { %v2281_v56 = vpop.eup %2280  ;;  %1832 = vst.msk [vmem:[%s3312_s26 + $0xa4] sm:$0xf] %vm1790_vm1, %v2029_v60  ;;  %v1513_v44 = vadd.f32 %v3303_v55, %v1442_v49  ;;  %v1373_v48 = vmul.f32 %v2279_v17, %v3177_v57  ;;  %v1252_v38 = vadd.f32 1e-05, %v1188_v9  ;;  %v1105_v18 = vpop.xlane.xlu1 %1104 }
 0x1b5   : > { %v1108_v11 = vpop.xlane.xlu0 %1107  ;;  %1833 = vst.msk [vmem:[%s3312_s26 + $0xa8] sm:$0xf] %vm1790_vm1, %v2030_v62  ;;  %v1514_v63 = vadd.f32 %v3303_v55, %v1443_v20  ;;  %v1374_v42 = vmul.f32 %v2281_v56, %v3185_v26  ;;  %2290 = vrsqrt.f32 %v1251_v24  ;;  %v1189_v40 = vmul.f32 0.0625, %v1105_v18 }
 0x1b6   : > { %v2031_v34 = vpack.c.bf16 %v1513_v44, %v1513_v44  ;;  %v1444_v52 = vmul.f32 %v3297_v31, %v1373_v48  ;;  %2292 = vrsqrt.f32 %v1252_v38  ;;  %v1190_v47 = vmul.f32 0.0625, %v1108_v11  ;;  %v3564_v44 = vld [vmem:[%s3645_s2] ss:$0 sm:$0xff] }
 0x1b7   : > { %v2283_v54 = vpop.eup %2282  ;;  %v2032_v57 = vpack.c.bf16 %v1514_v63, %v1514_v63  ;;  %v1445_v4 = vmul.f32 %v3297_v31, %v1374_v42  ;;  %v1253_v3 = vadd.f32 1e-05, %v1189_v40 }
 0x1b8   : > { %v2285_v53 = vpop.eup %2284  ;;  %1834 = vst.msk [vmem:[%s3312_s26 + $0xac] sm:$0xf] %vm1790_vm1, %v2031_v34  ;;  %v1515_v6 = vadd.f32 %v3303_v55, %v1444_v52  ;;  %v1375_v26 = vmul.f32 %v2283_v54, %v3749_v36  ;;  %v1254_v2 = vadd.f32 1e-05, %v1190_v47  ;;  %v1111_v58 = vpop.xlane.xlu1 %1110 }
 0x1b9   : > { %v1114_v33 = vpop.xlane.xlu0 %1113  ;;  %1835 = vst.msk [vmem:[%s3312_s26 + $0xb0] sm:$0xf] %vm1790_vm1, %v2032_v57  ;;  %v1516_v41 = vadd.f32 %v3303_v55, %v1445_v4  ;;  %v1376_v0 = vmul.f32 %v2285_v53, %v3197_v15  ;;  %2294 = vrsqrt.f32 %v1253_v3  ;;  %v1191_v59 = vmul.f32 0.0625, %v1111_v58 }
 0x1ba   : > { %v2033_v14 = vpack.c.bf16 %v1515_v6, %v1515_v6  ;;  %v1446_v39 = vmul.f32 %v3297_v31, %v1375_v26  ;;  %2296 = vrsqrt.f32 %v1254_v2  ;;  %v1192_v51 = vmul.f32 0.0625, %v1114_v33 }
 0x1bb   : > { %v2287_v16 = vpop.eup %2286  ;;  %v2034_v35 = vpack.c.bf16 %v1516_v41, %v1516_v41  ;;  %v1447_v5 = vmul.f32 %v3297_v31, %v1376_v0  ;;  %v1255_v45 = vadd.f32 1e-05, %v1191_v59 }
 0x1bc   : > { %v2289_v46 = vpop.eup %2288  ;;  %1836 = vst.msk [vmem:[%s3312_s26 + $0xb4] sm:$0xf] %vm1790_vm1, %v2033_v14  ;;  %v1517_v7 = vadd.f32 %v3303_v55, %v1446_v39  ;;  %v1377_v15 = vmul.f32 %v2287_v16, %v3201_v32  ;;  %v1256_v1 = vadd.f32 1e-05, %v1192_v51  ;;  %v1117_v22 = vpop.xlane.xlu1 %1116 }
 0x1bd   : > { %v1120_v21 = vpop.xlane.xlu0 %1119  ;;  %1837 = vst.msk [vmem:[%s3312_s26 + $0xb8] sm:$0xf] %vm1790_vm1, %v2034_v35  ;;  %v1518_v25 = vadd.f32 %v3303_v55, %v1447_v5  ;;  %v1378_v50 = vmul.f32 %v2289_v46, %v3209_v61  ;;  %2298 = vrsqrt.f32 %v1255_v45  ;;  %v1193_v19 = vmul.f32 0.0625, %v1117_v22 }
 0x1be   : > { %v2035_v27 = vpack.c.bf16 %v1517_v7, %v1517_v7  ;;  %v1448_v28 = vmul.f32 %v3297_v31, %v1377_v15  ;;  %2300 = vrsqrt.f32 %v1256_v1  ;;  %v1194_v43 = vmul.f32 0.0625, %v1120_v21 }
 0x1bf   : > { %v2291_v60 = vpop.eup %2290  ;;  %v2036_v32 = vpack.c.bf16 %v1518_v25, %v1518_v25  ;;  %v1449_v49 = vmul.f32 %v3297_v31, %v1378_v50  ;;  %v1257_v9 = vadd.f32 1e-05, %v1193_v19 }
 0x1c0   : > { %v2293_v17 = vpop.eup %2292  ;;  %1838 = vst.msk [vmem:[%s3312_s26 + $0xbc] sm:$0xf] %vm1790_vm1, %v2035_v27  ;;  %v1519_v62 = vadd.f32 %v3303_v55, %v1448_v28  ;;  %v1379_v61 = vmul.f32 %v2291_v60, %v3213_v23  ;;  %v1258_v20 = vadd.f32 1e-05, %v1194_v43  ;;  %v1123_v24 = vpop.xlane.xlu1 %1122  ;;  %v3571_v23 = vld [vmem:[%s3644_s1] ss:$0 sm:$0xff] }
 0x1c1   : > { %v1126_v56 = vpop.xlane.xlu0 %1125  ;;  %1839 = vst.msk [vmem:[%s3312_s26 + $0xc0] sm:$0xf] %vm1790_vm1, %v2036_v32  ;;  %v1520_v31 = vadd.f32 %v3564_v44, %v1449_v49  ;;  %v1380_v48 = vmul.f32 %v2293_v17, %v3221_v8  ;;  %2302 = vrsqrt.f32 %v1257_v9  ;;  %v1195_v38 = vmul.f32 0.0625, %v1123_v24  ;;  %v3750_v32 = vld [vmem:[#allocation16_spill] sm:$0xff]  ;;  %v3751_v9 = vld [vmem:[#allocation17_spill] sm:$0xff] }
 0x1c2   : > { %v2037_v55 = vpack.c.bf16 %v1519_v62, %v1519_v62  ;;  %v1450_v18 = vmul.f32 %v3571_v23, %v1379_v61  ;;  %2304 = vrsqrt.f32 %v1258_v20  ;;  %v1196_v11 = vmul.f32 0.0625, %v1126_v56 }
 0x1c3   : > { %v2295_v63 = vpop.eup %2294  ;;  %v2038_v42 = vpack.c.bf16 %v1520_v31, %v1520_v31  ;;  %v1451_v40 = vmul.f32 %v3571_v23, %v1380_v48  ;;  %v1259_v34 = vadd.f32 1e-05, %v1195_v38  ;;  %v3752_v38 = vld [vmem:[#allocation18_spill] sm:$0xff] }
 0x1c4   : > { %v2297_v52 = vpop.eup %2296  ;;  %1840 = vst.msk [vmem:[%s3312_s26 + $0xc4] sm:$0xf] %vm1790_vm1, %v2037_v55  ;;  %v1521_v8 = vadd.f32 %v3564_v44, %v1450_v18  ;;  %v1381_v47 = vmul.f32 %v2295_v63, %v3225_v30  ;;  %v1260_v54 = vadd.f32 1e-05, %v1196_v11  ;;  %v1129_v57 = vpop.xlane.xlu1 %1128  ;;  %v3753_v11 = vld [vmem:[#allocation19_spill] sm:$0xff] }
 0x1c5   : > { %v1132_v4 = vpop.xlane.xlu0 %1131  ;;  %1841 = vst.msk [vmem:[%s3312_s26 + $0xc8] sm:$0xf] %vm1790_vm1, %v2038_v42  ;;  %v1522_v3 = vadd.f32 %v3564_v44, %v1451_v40  ;;  %v1382_v53 = vmul.f32 %v2297_v52, %v3233_v10  ;;  %2306 = vrsqrt.f32 %v1259_v34  ;;  %v1197_v6 = vmul.f32 0.0625, %v1129_v57 }
 0x1c6   : > { %v2039_v36 = vpack.c.bf16 %v1521_v8, %v1521_v8  ;;  %v1452_v26 = vmul.f32 %v3571_v23, %v1381_v47  ;;  %2308 = vrsqrt.f32 %v1260_v54  ;;  %v1198_v2 = vmul.f32 0.0625, %v1132_v4  ;;  %v3754_v54 = vld [vmem:[#allocation20_spill] sm:$0xff] }
 0x1c7   : > { %v2299_v58 = vpop.eup %2298  ;;  %v2040_v30 = vpack.c.bf16 %v1522_v3, %v1522_v3  ;;  %v1453_v33 = vmul.f32 %v3571_v23, %v1382_v53  ;;  %v1261_v41 = vadd.f32 1e-05, %v1197_v6 }
 0x1c8   : > { %v2301_v0 = vpop.eup %2300  ;;  %1842 = vst.msk [vmem:[%s3312_s26 + $0xcc] sm:$0xf] %vm1790_vm1, %v2039_v36  ;;  %v1523_v59 = vadd.f32 %v3564_v44, %v1452_v26  ;;  %v1383_v10 = vmul.f32 %v2299_v58, %v3237_v29  ;;  %v1262_v14 = vadd.f32 1e-05, %v1198_v2  ;;  %v1135_v39 = vpop.xlane.xlu1 %1134 }
 0x1c9   : > { %1843 = vst.msk [vmem:[%s3312_s26 + $0xd0] sm:$0xf] %vm1790_vm1, %v2040_v30  ;;  %v1524_v51 = vadd.f32 %v3564_v44, %v1453_v33  ;;  %v1384_v16 = vmul.f32 %v2301_v0, %v3245_v13  ;;  %2310 = vrsqrt.f32 %v1261_v41  ;;  %v1199_v35 = vmul.f32 0.0625, %v1135_v39 }
 0x1ca   : > { %v2041_v5 = vpack.c.bf16 %v1523_v59, %v1523_v59  ;;  %v1454_v45 = vmul.f32 %v3571_v23, %v1383_v10  ;;  %2312 = vrsqrt.f32 %v1262_v14 }
 0x1cb   : > { %v2303_v46 = vpop.eup %2302  ;;  %v2042_v7 = vpack.c.bf16 %v1524_v51, %v1524_v51  ;;  %v1455_v29 = vmul.f32 %v3571_v23, %v1384_v16  ;;  %v1263_v15 = vadd.f32 1e-05, %v1199_v35 }
 0x1cc   : > { %v2305_v1 = vpop.eup %2304  ;;  %1844 = vst.msk [vmem:[%s3312_s26 + $0xd4] sm:$0xf] %vm1790_vm1, %v2041_v5  ;;  %v1525_v22 = vadd.f32 %v3564_v44, %v1454_v45  ;;  %v1385_v13 = vmul.f32 %v2303_v46, %v3249_v37 }
 0x1cd   : > { %1845 = vst.msk [vmem:[%s3312_s26 + $0xd8] sm:$0xf] %vm1790_vm1, %v2042_v7  ;;  %v1526_v21 = vadd.f32 %v3564_v44, %v1455_v29  ;;  %v1386_v25 = vmul.f32 %v2305_v1, %v3257_v12  ;;  %2314 = vrsqrt.f32 %v1263_v15 }
 0x1ce   : > { %v2043_v50 = vpack.c.bf16 %v1525_v22, %v1525_v22  ;;  %v1456_v19 = vmul.f32 %v3571_v23, %v1385_v13 }
 0x1cf   : > { %v2307_v27 = vpop.eup %2306  ;;  %v2044_v28 = vpack.c.bf16 %v1526_v21, %v1526_v21  ;;  %v1457_v43 = vmul.f32 %v3571_v23, %v1386_v25 }
 0x1d0   : > { %v2309_v60 = vpop.eup %2308  ;;  %1846 = vst.msk [vmem:[%s3312_s26 + $0xdc] sm:$0xf] %vm1790_vm1, %v2043_v50  ;;  %v1527_v37 = vadd.f32 %v3564_v44, %v1456_v19  ;;  %v1387_v49 = vmul.f32 %v2307_v27, %v3750_v32 }
 0x1d1   : > { %1847 = vst.msk [vmem:[%s3312_s26 + $0xe0] sm:$0xf] %vm1790_vm1, %v2044_v28  ;;  %v1528_v12 = vadd.f32 %v3564_v44, %v1457_v43  ;;  %v1388_v17 = vmul.f32 %v2309_v60, %v3751_v9 }
 0x1d2   : > { %v2045_v62 = vpack.c.bf16 %v1527_v37, %v1527_v37  ;;  %v1458_v61 = vmul.f32 %v3571_v23, %v1387_v49 }
 0x1d3   : > { %v2311_v20 = vpop.eup %2310  ;;  %v2046_v24 = vpack.c.bf16 %v1528_v12, %v1528_v12  ;;  %v1459_v56 = vmul.f32 %v3571_v23, %v1388_v17 }
 0x1d4   : > { %v2313_v31 = vpop.eup %2312  ;;  %1848 = vst.msk [vmem:[%s3312_s26 + $0xe4] sm:$0xf] %vm1790_vm1, %v2045_v62  ;;  %v1529_v48 = vadd.f32 %v3564_v44, %v1458_v61  ;;  %v1389_v55 = vmul.f32 %v2311_v20, %v3752_v38 }
 0x1d5   : > { %1849 = vst.msk [vmem:[%s3312_s26 + $0xe8] sm:$0xf] %vm1790_vm1, %v2046_v24  ;;  %v1530_v18 = vadd.f32 %v3564_v44, %v1459_v56  ;;  %v1390_v63 = vmul.f32 %v2313_v31, %v3753_v11 }
 0x1d6   : > { %v2047_v42 = vpack.c.bf16 %v1529_v48, %v1529_v48  ;;  %v1460_v40 = vmul.f32 %v3571_v23, %v1389_v55 }
 0x1d7   : > { %v2315_v34 = vpop.eup %2314  ;;  %v2048_v52 = vpack.c.bf16 %v1530_v18, %v1530_v18  ;;  %v1461_v8 = vmul.f32 %v3571_v23, %v1390_v63 }
 0x1d8   : > { %1850 = vst.msk [vmem:[%s3312_s26 + $0xec] sm:$0xf] %vm1790_vm1, %v2047_v42  ;;  %v1531_v47 = vadd.f32 %v3564_v44, %v1460_v40  ;;  %v1391_v57 = vmul.f32 %v2315_v34, %v3754_v54 }
 0x1d9   : > { %1851 = vst.msk [vmem:[%s3312_s26 + $0xf0] sm:$0xf] %vm1790_vm1, %v2048_v52  ;;  %v1532_v4 = vadd.f32 %v3564_v44, %v1461_v8 }
 0x1da   : > { %v2049_v3 = vpack.c.bf16 %v1531_v47, %v1531_v47  ;;  %v1462_v53 = vmul.f32 %v3571_v23, %v1391_v57 }
 0x1db   : > { %v2050_v6 = vpack.c.bf16 %v1532_v4, %v1532_v4 }
 0x1dc   : > { %1852 = vst.msk [vmem:[%s3312_s26 + $0xf4] sm:$0xf] %vm1790_vm1, %v2049_v3  ;;  %v1533_v36 = vadd.f32 %v3564_v44, %v1462_v53 }
 0x1dd   : > { %1853 = vst.msk [vmem:[%s3312_s26 + $0xf8] sm:$0xf] %vm1790_vm1, %v2050_v6 }
 0x1de   : > { %v2051_v26 = vpack.c.bf16 %v1533_v36, %v1533_v36 }
 0x1e0   : > { %1854 = vst.msk [vmem:[%s3312_s26 + $0xfc] sm:$0xf] %vm1790_vm1, %v2051_v26 }
 0x1e1 PF: > { %s13_s12 = sadd.s32 1, %s2324_s12  }
 0x1e2   : > { %p10_p4 = scmp.ge.s32.totalorder %s13_s12, 4  }
 0x1e4   :  { %12 = sbr.rel (!%p10_p4) target bundleno = 1 (0x1), region = 62 }

// kernel: patch_merging_forward.3
= control target key start
LH: loop header
LB: loop body
LE: loop exit
PB: predicated region body
PF: predicated region fallthrough
CT: control target
= control target key end

     0   :  { %s942_s0 = inlined_call_operand.vmem [shape: s32[162], index: 0, kind: input, shape index: {}]   ;;  %s943_s1 = inlined_call_operand.vmem [shape: bf16[16,5,5,5,16], index: 1, kind: input, shape index: {}]   ;;  %s944_s2 = inlined_call_operand.vmem [shape: bf16[27,16,32], index: 2, kind: input, shape index: {}]   ;;  %s945_s3 = inlined_call_operand.vmem [shape: f32[1,32], index: 3, kind: input, shape index: {}]   ;;  %s946_s4 = inlined_call_operand.vmem [shape: f32[2,4,16,32], index: 4, kind: output, shape index: {}]  }
   0x1   :  { %s9_s17 = sshll.u32 %s942_s0, 4  ;;  %s10_s17 = int_to_ptr.vmem [resolvable:$true] %s9_s17 }
   0x2   :  { %s731_s18 = scalar_lea.vmem %s10_s17, 32  ;;  %p736_p1 = scmp.lt.s32.totalorder %s10_s17, %s10_s17 }
   0x3   :  { %p732_p0 = scmp.ne.s32.totalorder %s10_s17, %s731_s18  ;;  %p737_p2 = scmp.lt.s32.totalorder %s731_s18, %s731_s18 }
   0x5   :  { %p738_p3 = por %p737_p2, %p736_p1 }
   0x7   :  { %p739_p4 = pnand %p738_p3, %p732_p0 }
   0x9   :  { %742 = shalt.err (!%p739_p4)  }
   0xa   :  { %s801_s19 = smov [#allocation4]  }
   0xb   :  { %12 = dma.vmem_to_smem %s10_s17, 32, %s801_s19, [#allocation3] }
   0xc   :  { %771 = dma.done.wait [#allocation3], 32 }
   0xd   :  { %772 = vsyncadd [#allocation3], 4294967264 }
   0xe   :  { %14 = sfence }
   0xf   :  { %s834_s20 = smov 0   ;;  %s836_s21 = smov 0  }
  0x10   :  { %s838_s22 = smov 0   ;;  %s840_s0 = smov 0  }
  0x11   :  { %s842_s23 = smov 0   ;;  %s844_s24 = smov 0  }
  0x12   :  { %s846_s25 = smov 0  }
  0x13 LB: > { %948 = sst [smem:[#allocation6_spill]] %s795_s24  ;;  %s32_s26 = sadd.s32 1, %s787_s0  ;;  %s799_s25 = sphi %s846_s25, %s20_s25   ;;  %s795_s24 = sphi %s844_s24, %s955_s24   ;;  %s791_s23 = sphi %s842_s23, %s959_s23   ;;  %s787_s0 = sphi %s840_s0, %s958_s0   ;;  %s783_s22 = sphi %s838_s22, %s952_s22   ;;  %s779_s21 = sphi %s836_s21, %s957_s21   ;;  %s775_s20 = sphi %s834_s20, %s956_s20  }
  0x14   : > { %p33_p5 = scmp.ge.s32.totalorder %s32_s26, 27  ;;  %s35_s27 = sadd.s32 1, %s791_s23 }
  0x15   : > { %p641_p6 = scmp.ge.s32.totalorder %s799_s25, 1  ;;  %p241_p7 = scmp.lt.s32.totalorder %s799_s25, 217 }
  0x16   : > { %s961_s26 = smov (%p33_p5, %s32_s26), 0  ;;  %s963_s27 = smov (!%p33_p5, %s35_s27), %s791_s23 }
  0x17   : > { %949 = sst [smem:[#allocation7_spill]] %s961_s26  ;;  %p242_p8 = pnand %p641_p6, %p241_p7 }
  0x18   : > { %p37_p9 = scmp.ge.s32.totalorder %s963_s27, 4  ;;  %s39_s28 = sadd.s32 1, %s795_s24 }
  0x19   : > { %245 = sbr.rel (%p242_p8) target bundleno = 310 (0x136), region = 32  ;;  %s642_s29 = sshll.u32 (!%p242_p8), %s783_s22, 3 }
  0x1a   : > { %s965_s27 = smov (%p37_p9, %s963_s27), 0  ;;  %s967_s28 = smov (!%p37_p9, %s39_s28), %s795_s24 }
  0x1b   : > { %950 = sst [smem:[#allocation8_spill]] %s965_s27  ;;  %p41_p10 = scmp.ge.s32.totalorder %s967_s28, 2 }
  0x1c   : > { %s884_s30 = smul.u32 (!%p242_p8), 6, %s775_s20  ;;  %p332_p11 = scmp.lt.s32.totalorder (!%p242_p8), %s775_s20, 26 }
  0x1d   : > { %s969_s28 = smov (%p41_p10, %s967_s28), 0  ;;  %p337_p12 = scmp.lt.s32.totalorder (!%p242_p8), %s783_s22, 1 }
  0x1e   : > { %951 = sst [smem:[#allocation9_spill]] %s969_s28  ;;  %s298_s6 = sadd.s32 (!%p242_p8), 1, %s884_s30 }
  0x1f   : > { %s295_s5 = sld [smem:[#allocation4 + %s884_s30]] (!%p242_p8)  ;;  %s302_s8 = sadd.s32 (!%p242_p8), 2, %s884_s30 }
  0x20   : > { %s299_s7 = sld [smem:[#allocation4 + %s298_s6]]  ;;  %s305_s10 = sadd.s32 3, %s884_s30 }
  0x21   : > { %s303_s9 = sld [smem:[#allocation4 + %s302_s8]]  ;;  %p339_p13 = scmp.lt.s32.totalorder %s779_s21, 3 }
  0x22   : > { %s306_s11 = sld [smem:[#allocation4 + %s305_s10]]  ;;  %s971_s22 = smov (!%p337_p12, %s783_s22), 1 }
  0x23   : > { %s333_s12 = scalar_select %p332_p11, %s775_s20, 26 }
  0x24   : > { %s649_s24 = sshll.u32 %s971_s22, 3  ;;  %p651_p2 = scmp.ne.s32.totalorder %s775_s20, 0 }
  0x25   : > { %s643_s13 = sshll.u32 %s295_s5, 2  ;;  %s658_s14 = sshll.u32 %s333_s12, 3  ;;  %vm351_vm0 = vcmask (!%p651_p2), 261120   ;;  %v802_v0 = vmov (!%p651_p2), 0.0  }
  0x26   : > { %s297_s15 = sadd.s32 %s643_s13, %s642_s29  ;;  %s644_s16 = sshll.u32 %s299_s7, 1  ;;  %352 = vst.msk [vmem:[#allocation2] sm:$0xff] (!%p651_p2), %vm351_vm0, %v802_v0  ;;  %353 = vst.msk [vmem:[#allocation2 + $0x8] sm:$0xff] (!%p651_p2), %vm351_vm0, %v802_v0 }
  0x27   : > { %s301_s17 = sadd.s32 %s644_s16, %s297_s15  ;;  %s336_s28 = scalar_lea.vmem %s944_s2, %s658_s14 }
  0x28   : > { %s304_s27 = sadd.s32 %s303_s9, %s301_s17  ;;  %s307_s26 = sadd.s32 %s779_s21, %s306_s11 }
  0x29   : > { %p308_p0 = scmp.lt.s32.totalorder %s304_s27, 15  ;;  %p310_p1 = scmp.lt.s32.totalorder %s307_s26, 4 }
  0x2a   : > { %s973_s21 = smov (!%p339_p13, %s779_s21), 3 }
  0x2b   : > { %s975_s27 = smov (!%p308_p0, %s304_s27), 15  ;;  %s977_s26 = smov (!%p310_p1, %s307_s26), 4 }
  0x2c   : > { %s668_s6 = smul.u32 25, %s975_s27  ;;  %s648_s8 = sshll.u32 %s973_s21, 1 }
  0x2d   : > { %s667_s10 = smul.u32 5, %s977_s26  ;;  %s343_s5 = sadd.s32 %s649_s24, %s648_s8 }
  0x2e   : > { %s650_s29 = sshll.u32 %s343_s5, 3  ;;  %350 = sbr.rel (%p651_p2) target bundleno = 53 (0x35), region = 36 }
  0x2f   : > { %s314_s12 = sadd.s32 %s668_s6, %s667_s10  ;;  %s903_s16 = scalar_lea.vmem %s946_s4, %s650_s29 }
  0x30   : > { %s645_s7 = sshll.u32 %s314_s12, 2 }
  0x31   : > { %s316_s14 = scalar_lea.vmem %s943_s1, %s645_s7 }
  0x35 PF: > { %v730_v1 = vld [vmem:[%s336_s28] sm:$0xff]   ;;  %v803_v2 = vmov 0.0   ;;  %s355_s21 = sadd.s32 4, %s884_s30  ;;  %s357_s22 = sadd.s32 5, %s884_s30  ;;  %vm804_vm1 = vmmov 0   ;;  %v433_v11 = vlaneseq  ;;  %vm451_vm4 = vcmask 130048  }
  0x36   : > { %661 = vmatprep.subr.bf16.mxu0 %v803_v2  ;;  %663 = vmatprep.mubr.msk.bf16.mxu0 %vm804_vm1, %v803_v2  ;;  %s356_s24 = sld [smem:[#allocation4 + %s355_s21]]  ;;  %v359_v3 = vld [vmem:[%s316_s14] sm:$0x7]  ;;  %v360_v4 = vld [vmem:[%s316_s14 + $0x4] sm:$0x7]  ;;  %vm498_vm5 = vcmask 261120  }
  0x37   : > { %662 = vmatpush3.bf16.msra.mxu0 %v730_v1  ;;  %s358_s26 = sld [smem:[#allocation4 + %s357_s22]]  ;;  %v361_v5 = vld [vmem:[%s316_s14 + $0x8] sm:$0x7]  ;;  %v362_v6 = vld [vmem:[%s316_s14 + $0xc] sm:$0x7]  ;;  %v434_v35 = vshrl.u32 %v433_v11, 7 }
  0x38   : > { %v363_v7 = vld [vmem:[%s316_s14 + $0x10] sm:$0x7]  ;;  %v805_v9 = vmov 1983009808   ;;  %v420_v53 = vld [vmem:[#allocation2] sm:$0xff]  ;;  %v421_v55 = vld [vmem:[#allocation2 + $0x8] sm:$0xff] }
  0x39   : > { %v431_v10 = vunpack.c.l.s4 %v805_v9  ;;  %p654_p5 = scmp.ne.s32.totalorder %s775_s20, 26 }
  0x3a   : > { %v655_v62 = vld [vmem:[%s945_s3] ss:$0 sm:$0xff] (!%p654_p5) }
  0x3b   : > { %v432_v34 = vunpack.c.0.s8 %v431_v10 }
  0x3c   : > { %p364_p3 = scmp.eq.s32.totalorder %s356_s24, 0 }
  0x3d   : > { %p372_p4 = scmp.eq.s32.totalorder %s358_s26, 0  ;;  %v435_v44 = vsub.s32 %v432_v34, %v434_v35 }
  0x3e   : > { %s365_s27 = scalar_select %p364_p3, 1, 0 }
  0x3f   : > { %s373_s28 = scalar_select %p372_p4, 1, 0 }
  0x40   : > { %v366_v8 = vstv %s365_s27 }
  0x41   : > { %vm367_vm2 = vcmp.eq.s32.totalorder %v366_v8, 1  ;;  %v374_v16 = vstv %s373_s28 }
  0x42   : > { %v368_v12 = vsel %vm367_vm2, %v359_v3, %v360_v4  ;;  %v369_v13 = vsel %vm367_vm2, %v360_v4, %v361_v5  ;;  %v370_v14 = vsel %vm367_vm2, %v361_v5, %v362_v6  ;;  %v371_v15 = vsel %vm367_vm2, %v362_v6, %v363_v7 }
  0x43   : > { %v377_v17 = vshrl.u32 %v368_v12, 16  ;;  %v380_v18 = vshll.u32 %v368_v12, 16  ;;  %v386_v19 = vshrl.u32 %v369_v13, 16  ;;  %v389_v20 = vshll.u32 %v369_v13, 16 }
  0x44   : > { %v395_v21 = vshrl.u32 %v370_v14, 16  ;;  %v398_v22 = vshll.u32 %v370_v14, 16  ;;  %v404_v23 = vshrl.u32 %v371_v15, 16  ;;  %v407_v27 = vshll.u32 %v371_v15, 16 }
  0x45   : > { %v379_v24 = vrot.slane %v377_v17, 4  ;;  %v382_v25 = vrot.slane %v380_v18, 5  ;;  %v388_v26 = vrot.slane %v386_v19, 4  ;;  %v391_v28 = vrot.slane %v389_v20, 5 }
  0x46   : > { %v397_v29 = vrot.slane %v395_v21, 4  ;;  %v400_v30 = vrot.slane %v398_v22, 5  ;;  %v406_v31 = vrot.slane %v404_v23, 4  ;;  %v409_v33 = vrot.slane %v407_v27, 5 }
  0x47   : > { %v383_v32 = vor.u32 %v382_v25, %v379_v24  ;;  %vm375_vm3 = vcmp.eq.s32.totalorder %v374_v16, 1  ;;  %v392_v36 = vor.u32 %v391_v28, %v388_v26 }
  0x48   : > { %v401_v37 = vor.u32 %v400_v30, %v397_v29  ;;  %v410_v39 = vor.u32 %v409_v33, %v406_v31 }
  0x49   : > { %v384_v38 = vrot.slane %v383_v32, 4  ;;  %v393_v40 = vrot.slane %v392_v36, 4 }
  0x4a   : > { %v402_v41 = vrot.slane %v401_v37, 4  ;;  %v411_v42 = vrot.slane %v410_v39, 4 }
  0x4b   : > { %v416_v43 = vsel %vm375_vm3, %v368_v12, %v384_v38  ;;  %v417_v45 = vsel %vm375_vm3, %v369_v13, %v393_v40 }
  0x4c   : > { %v418_v46 = vsel %vm375_vm3, %v370_v14, %v402_v41  ;;  %v419_v47 = vsel %vm375_vm3, %v371_v15, %v411_v42  ;;  %v428_v48 = vcombine.low %v416_v43, %v417_v45 }
  0x4d   : > { %v429_v49 = vcombine.low %v418_v46, %v419_v47 }
  0x4e   : > { %v436_v50 = vrot.slane %v428_v48, %v435_v44 }
  0x4f   : > { %v443_v51 = vrot.slane %v429_v49, %v435_v44 }
  0x51   : > { %v444_v52 = vcombine.low %v436_v50, %v443_v51 }
  0x53   : > { %664 = vmatmul.mubr.msk.bf16.vlgmr.msra.gmra.mrb[0].mxu0 %vm451_vm4, %v444_v52 }
 0x125   : > { %504 = sbr.rel (%p654_p5) target bundleno = 310 (0x136), region = 40 }
 0x126   : > { %v489_v54 = vpop.f32.mrb[0].mxu0 }
 0x127   : > { %v496_v56 = vadd.f32 %v489_v54, %v420_v53  ;;  %v665_v57 = vpop.f32.mrb[1].mxu0 }
 0x128   : > { %v492_v58 = vpop.f32.mrb[2].mxu0 }
 0x129   : > { %499 = vst.msk [vmem:[#allocation2] sm:$0xff] %vm498_vm5, %v496_v56  ;;  %v497_v59 = vadd.f32 %v492_v58, %v421_v55  ;;  %v666_v60 = vpop.f32.mrb[3].mxu0 }
 0x12b   : > { %500 = vst.msk [vmem:[#allocation2 + $0x8] sm:$0xff] %vm498_vm5, %v497_v59 }
 0x130   : > { %v505_v61 = vld [vmem:[#allocation2] sm:$0xff] }
 0x131   : > { %v514_v0 = vadd.f32 %v655_v62, %v505_v61 }
 0x132   : > { %v506_v63 = vld [vmem:[#allocation2 + $0x8] sm:$0xff] }
 0x133   : > { %v515_v1 = vadd.f32 %v655_v62, %v506_v63  ;;  %516 = vst.msk [vmem:[%s903_s16] sm:$0xff] %vm498_vm5, %v514_v0 }
 0x135   : > { %517 = vst.msk [vmem:[%s903_s16 + $0x8] sm:$0xff] %vm498_vm5, %v515_v1 }
 0x136 PF: > { %s20_s25 = sadd.s32 1, %s799_s25   ;;  %s952_s22 = sld [smem:[#allocation6_spill]] }
 0x137   : > { %p17_p6 = scmp.ge.s32.totalorder %s20_s25, 218   ;;  %s953_s18 = sld [smem:[#allocation7_spill]] }
 0x138   : > { %s954_s19 = sld [smem:[#allocation8_spill]]  ;;  %s955_s24 = sld [smem:[#allocation9_spill]] }
 0x139   : > { %s956_s20 = smov %s787_s0  ;;  %s957_s21 = smov %s791_s23 }
 0x13a   :  { %19 = sbr.rel (!%p17_p6) target bundleno = 19 (0x13), region = 73 }
 0x13d   : > { %s958_s0 = smov %s953_s18 }
 0x13e   : > { %s959_s23 = smov %s954_s19 }

</bundles_post_ra>
